<compile_context>
chip_gen: v6e
topology: v6e:2x2x1
jax: 0.10.0
libtpu: 0.0.40
codegen_flags: <defaults>
</compile_context>

<pallas_src>
from functools import partial

import numpy as np
import jax
import jax.numpy as jnp
from jax import lax
from jax.experimental import pallas as pl
from jax.experimental.pallas import tpu as pltpu


# ------------------------------ fused kernel --------------------------------

def _fused_contrastive_kernel(
    # VMEM inputs
    use_perm_ref,   # (B, 1)   f32  1.0 -> aug0 (permutation), 0.0 -> aug1 (dropout)
    p_ref,          # (B, B)   f32  one-hot permutation matrix (aug0)
    g1_ref,         # (NB, B)  f32  one-hot gather  base[rand_index1]
    g2_ref,         # (NB, B)  f32  one-hot gather  base[rand_index2]
    r_ref,          # (NB, B)  f32  repeat_interleave(., neg_num, dim=0) matrix
    rt_ref,         # (B, NB)  f32  fold rows:  rt[i, r]   = [r // neg_num == i]
    cmod_ref,       # (NB, Nn) f32  fold cols:  cmod[r, j] = [r %  neg_num == j]
    base_ref,       # (B, D)   f32
    ctx_ref,        # (B, D)   f32
    drop_ref,       # (B, D)   f32  inverted-dropout mask (already / (1 - p))
    pos1_ref,       # (B, H)   f32  pos_out1
    w_ref,          # (D, H)   f32  first half of fn's weight
    b_ref,          # (1, H)   f32  first half of fn's bias
    # output
    loss_ref,       # (1, 1)   f32
    *, inv_temp, merge_prod,
):
    f32 = jnp.float32
    eps = 1e-8
    B = base_ref.shape[0]
    NB = r_ref.shape[0]
    H = pos1_ref.shape[1]

    def mm(a, b):   # f32 MXU matmul; HIGHEST keeps one-hot selection exact
        return jnp.dot(a, b, preferred_element_type=f32,
                       precision=lax.Precision.HIGHEST)

    merge = (lambda a, b: a * b) if merge_prod else (lambda a, b: a + b)

    base = base_ref[...]
    ctx = ctx_ref[...]
    R = r_ref[...]

    # ---- augment(): per-row choice between permuted context and dropout -----
    permuted = mm(p_ref[...], ctx)                     # aug0: context[randperm]
    dropped = ctx * drop_ref[...]                      # aug1: dim-level dropout
    aug = jnp.where(use_perm_ref[...] > 0.5, permuted, dropped)      # (B, D)

    # ---- stacked LHS [ pos ; neg1 ; neg2 ] built as an SSA value ------------
    # negative rows are i-major (r = i*neg_num + j), matching repeat_interleave
    lhs = jnp.concatenate(
        [merge(base, aug),                             # pos_input          (B,  D)
         merge(mm(g1_ref[...], base), mm(R, ctx)),     # base[idx1] . ctx_rep (NB, D)
         merge(mm(g2_ref[...], base), mm(R, aug))],    # base[idx2] . aug_rep (NB, D)
        axis=0)                                        # (B + 2*NB, D)

    # ---- fn(): one MXU matmul over the consumed first half of out_dim -------
    out = mm(lhs, w_ref[...]) + b_ref[...]             # (B + 2*NB, H)

    p1 = pos1_ref[...]                                 # (B,  H) pos_out1 (given)
    p2 = out[0:B, :]                                   # (B,  H) pos_out2
    n1 = out[B:B + NB, :]                              # (NB, H) neg_out1
    n2 = out[B + NB:B + 2 * NB, :]                     # (NB, H) neg_out2

    # ---- cosine similarity (torch semantics: dot / max(||a||*||b||, eps)) ---
    def norm(x):
        return jnp.sqrt(jnp.sum(x * x, axis=1, keepdims=True))

    def cos(a, b):
        return jnp.sum(a * b, axis=1, keepdims=True) / \
            jnp.maximum(norm(a) * norm(b), eps)

    rep = mm(R, jnp.concatenate([p1, p2], axis=1))     # repeat_interleave(pos_out{1,2})
    p1_rep, p2_rep = rep[:, :H], rep[:, H:]            # (NB, H) each

    pos_sim = cos(p1, p2)                              # (B, 1)
    neg_sim1 = cos(p1_rep, n1)                         # (NB, 1)  i-major
    neg_sim2 = cos(p2_rep, n2)                         # (NB, 1)

    # fold i-major (NB,1) columns into (B, neg_num):  M[i, j] = v[i*neg_num + j]
    fold1 = mm(rt_ref[...], cmod_ref[...] * neg_sim1)  # (B, neg_num)
    fold2 = mm(rt_ref[...], cmod_ref[...] * neg_sim2)  # (B, neg_num)

    sims = jnp.concatenate([pos_sim, fold1, fold2], axis=1)   # (B, 1 + 2*neg_num)
    out_merge = jnp.exp(sims * inv_temp)               # exp(sim / temp), one EUP pass

    # ---- loss_f: softmax(dim=1) then CrossEntropy(target = 0) ---------------
    # (double-softmax quirk kept intentionally to match the torch reference)
    zmax = jnp.max(out_merge, axis=1, keepdims=True)
    e = jnp.exp(out_merge - zmax)
    probs = e / jnp.sum(e, axis=1, keepdims=True)      # softmax(dim=1)
    pmax = jnp.max(probs, axis=1, keepdims=True)
    lse = jnp.log(jnp.sum(jnp.exp(probs - pmax), axis=1, keepdims=True)) + pmax
    per_row = lse - probs[:, 0:1]                      # -log_softmax(probs)[:, 0]
    loss_ref[...] = jnp.sum(per_row, axis=0, keepdims=True) * (1.0 / B)


# ------------------------------ forward glue ---------------------------------

def contrastive_forward(base, context, pos_out1, w, b, key, *,
                        temp, neg_num, out_dim, merge="prod", droprate=0.5):
    B, D = base.shape
    half = out_dim // 2
    NB = B * neg_num
    f32 = jnp.float32

    # ----- RNG (matches the torch module's host-side random draws) -----------
    k_choice, k_perm, k_drop, k_idx1, k_idx2 = jax.random.split(key, 5)
    use_perm = (jax.random.randint(k_choice, (B, 1), 0, 2) == 0).astype(f32)
    perm = jax.random.permutation(k_perm, B)                       # randperm
    keep = jax.random.bernoulli(k_drop, 1.0 - droprate, (B, D))
    drop_mask = keep.astype(f32) / (1.0 - droprate)                 # inverted dropout
    idx1 = jax.random.randint(k_idx1, (NB,), 0, B)                  # multinomial (uniform)
    idx2 = jax.random.randint(k_idx2, (NB,), 0, B)

    # ----- tiny one-hot selection matrices (replace in-kernel row gathers) ---
    P = jax.nn.one_hot(perm, B, dtype=f32)             # (B, B)    aug0 permutation
    G1 = jax.nn.one_hot(idx1, B, dtype=f32)            # (NB, B)   base[rand_index1]
    G2 = jax.nn.one_hot(idx2, B, dtype=f32)            # (NB, B)   base[rand_index2]
    r = np.arange(NB)
    R = jnp.asarray(r[:, None] // neg_num == np.arange(B)[None, :],
                    dtype=f32)                         # (NB, B)   repeat_interleave
    RT = jnp.asarray(np.arange(B)[:, None] == r[None, :] // neg_num,
                     dtype=f32)                        # (B, NB)   fold rows
    CMOD = jnp.asarray(r[:, None] % neg_num == np.arange(neg_num)[None, :],
                       dtype=f32)                      # (NB, Nn)  fold cols

    # only the first half of fn's output is consumed (torch.split(..)[0])
    w_half = w[:, :half].astype(f32)
    b_half = b[:half].reshape(1, half).astype(f32)

    kernel = partial(_fused_contrastive_kernel,
                     inv_temp=1.0 / float(temp),
                     merge_prod=(merge == "prod"))

    full = lambda i: (0, 0)
    in_specs = [
        pl.BlockSpec((B, 1), full),          # use_perm
        pl.BlockSpec((B, B), full),          # P
        pl.BlockSpec((NB, B), full),         # G1
        pl.BlockSpec((NB, B), full),         # G2
        pl.BlockSpec((NB, B), full),         # R
        pl.BlockSpec((B, NB), full),         # RT
        pl.BlockSpec((NB, neg_num), full),   # CMOD
        pl.BlockSpec((B, D), full),          # base
        pl.BlockSpec((B, D), full),          # context
        pl.BlockSpec((B, D), full),          # dropout mask
        pl.BlockSpec((B, half), full),       # pos_out1
        pl.BlockSpec((D, half), full),       # W   (first half only)
        pl.BlockSpec((1, half), full),       # bias (first half only)
    ]

    # grid=(1,): the whole working set is a few KiB, far below VMEM on
    # v5e/v6e (128 MiB) and v7x (64 MiB).  If B is ever scaled up, tile the
    # batch axis here and mark it "parallel" (v7x 2-TC split); at B=8 a single
    # block is optimal, so default input buffering is left as-is.
    loss2d = pl.pallas_call(
        kernel,
        out_shape=jax.ShapeDtypeStruct((1, 1), f32),
        grid=(1,),
        in_specs=in_specs,
        out_specs=pl.BlockSpec((1, 1), full),
        compiler_params=pltpu.CompilerParams(
            dimension_semantics=("arbitrary",)),
    )(use_perm, P, G1, G2, R, RT, CMOD,
      base.astype(f32), context.astype(f32), drop_mask,
      pos_out1.astype(f32), w_half, b_half)

    return loss2d[0, 0]


# ---------------------------------- main -------------------------------------

if __name__ == "__main__":
    # ContrastiveModel args: temp=0.1, n_neg_cl=4, out_dim=32, merge='prod'
    B, D, OUT_DIM, NEG = 8, 32, 32, 4
    TEMP = 0.1

    key = jax.random.PRNGKey(0)
    k_base, k_ctx, k_pos, k_w, k_b, k_model = jax.random.split(key, 6)

    base = jax.random.normal(k_base, (B, D), jnp.float32)
    context = jax.random.normal(k_ctx, (B, D), jnp.float32)
    pos_out1 = jax.random.normal(k_pos, (B, OUT_DIM // 2), jnp.float32)

    # TODO(synk): `fn` is an arbitrary encoder in the torch module; modeled here
    # as a deterministic linear layer D -> out_dim.
    w = jax.random.normal(k_w, (D, OUT_DIM), jnp.float32) * 0.1
    b = jax.random.normal(k_b, (OUT_DIM,), jnp.float32) * 0.1

    loss = contrastive_forward(
        base, context, pos_out1, w, b, k_model,
        temp=TEMP, neg_num=NEG, out_dim=OUT_DIM, merge="prod", droprate=0.5,
    )
    loss = jax.block_until_ready(loss)
    assert jnp.isfinite(loss)
    print("KERNEL_OK")
</pallas_src>

<mosaic_0001>
module attributes {stable_mosaic.version = 11 : i64} {
  func.func @_fused_contrastive_kernel(%arg0: i32, %arg1: memref<8x1xf32, #tpu.memory_space<vmem>>, %arg2: memref<8x8xf32, #tpu.memory_space<vmem>>, %arg3: memref<32x8xf32, #tpu.memory_space<vmem>>, %arg4: memref<32x8xf32, #tpu.memory_space<vmem>>, %arg5: memref<32x8xf32, #tpu.memory_space<vmem>>, %arg6: memref<8x32xf32, #tpu.memory_space<vmem>>, %arg7: memref<32x4xf32, #tpu.memory_space<vmem>>, %arg8: memref<8x32xf32, #tpu.memory_space<vmem>>, %arg9: memref<8x32xf32, #tpu.memory_space<vmem>>, %arg10: memref<8x32xf32, #tpu.memory_space<vmem>>, %arg11: memref<8x16xf32, #tpu.memory_space<vmem>>, %arg12: memref<32x16xf32, #tpu.memory_space<vmem>>, %arg13: memref<1x16xf32, #tpu.memory_space<vmem>>, %arg14: memref<1x1xf32, #tpu.memory_space<vmem>>) attributes {dimension_semantics = [#tpu.dimension_semantics<arbitrary>], iteration_bounds = array<i64: 1>, scalar_prefetch = 0 : i64, scratch_operands = 0 : i64, tpu.core_type = #tpu.core_type<tc>, window_params = [{pipeline_mode = #tpu.pipeline_mode<synchronous>, transform_indices = @transform_0, window_bounds = array<i64: 8, 1>}, {pipeline_mode = #tpu.pipeline_mode<synchronous>, transform_indices = @transform_1, window_bounds = array<i64: 8, 8>}, {pipeline_mode = #tpu.pipeline_mode<synchronous>, transform_indices = @transform_2, window_bounds = array<i64: 32, 8>}, {pipeline_mode = #tpu.pipeline_mode<synchronous>, transform_indices = @transform_3, window_bounds = array<i64: 32, 8>}, {pipeline_mode = #tpu.pipeline_mode<synchronous>, transform_indices = @transform_4, window_bounds = array<i64: 32, 8>}, {pipeline_mode = #tpu.pipeline_mode<synchronous>, transform_indices = @transform_5, window_bounds = array<i64: 8, 32>}, {pipeline_mode = #tpu.pipeline_mode<synchronous>, transform_indices = @transform_6, window_bounds = array<i64: 32, 4>}, {pipeline_mode = #tpu.pipeline_mode<synchronous>, transform_indices = @transform_7, window_bounds = array<i64: 8, 32>}, {pipeline_mode = #tpu.pipeline_mode<synchronous>, transform_indices = @transform_8, window_bounds = array<i64: 8, 32>}, {pipeline_mode = #tpu.pipeline_mode<synchronous>, transform_indices = @transform_9, window_bounds = array<i64: 8, 32>}, {pipeline_mode = #tpu.pipeline_mode<synchronous>, transform_indices = @transform_10, window_bounds = array<i64: 8, 16>}, {pipeline_mode = #tpu.pipeline_mode<synchronous>, transform_indices = @transform_11, window_bounds = array<i64: 32, 16>}, {pipeline_mode = #tpu.pipeline_mode<synchronous>, transform_indices = @transform_12, window_bounds = array<i64: 1, 16>}, {pipeline_mode = #tpu.pipeline_mode<synchronous>, transform_indices = @transform_13, window_bounds = array<i64: 1, 1>}]} {
    %c0 = arith.constant 0 : index
    %c0_0 = arith.constant 0 : index
    %0 = vector.load %arg8[%c0, %c0_0] : memref<8x32xf32, #tpu.memory_space<vmem>>, vector<8x32xf32>
    %c0_1 = arith.constant 0 : index
    %c0_2 = arith.constant 0 : index
    %1 = vector.load %arg9[%c0_1, %c0_2] : memref<8x32xf32, #tpu.memory_space<vmem>>, vector<8x32xf32>
    %c0_3 = arith.constant 0 : index
    %c0_4 = arith.constant 0 : index
    %2 = vector.load %arg5[%c0_3, %c0_4] : memref<32x8xf32, #tpu.memory_space<vmem>>, vector<32x8xf32>
    %c0_5 = arith.constant 0 : index
    %c0_6 = arith.constant 0 : index
    %3 = vector.load %arg2[%c0_5, %c0_6] : memref<8x8xf32, #tpu.memory_space<vmem>>, vector<8x8xf32>
    %cst = arith.constant dense<0.000000e+00> : vector<8x32xf32>
    %4 = tpu.matmul %3, %1, %cst {dimension_numbers = #tpu.dot_dimension_numbers<[1], [0], [0], [1], [0, 0, 1, 1], [], []>, precision = #tpu.contract_precision<fp32>} : vector<8x8xf32>, vector<8x32xf32>, vector<8x32xf32> -> vector<8x32xf32>
    %c0_7 = arith.constant 0 : index
    %c0_8 = arith.constant 0 : index
    %5 = vector.load %arg10[%c0_7, %c0_8] : memref<8x32xf32, #tpu.memory_space<vmem>>, vector<8x32xf32>
    %6 = arith.mulf %1, %5 : vector<8x32xf32>
    %c0_9 = arith.constant 0 : index
    %c0_10 = arith.constant 0 : index
    %7 = vector.load %arg1[%c0_9, %c0_10] : memref<8x1xf32, #tpu.memory_space<vmem>>, vector<8x1xf32>
    %cst_11 = arith.constant 5.000000e-01 : f32
    %8 = vector.broadcast %cst_11 : f32 to vector<8x1xf32>
    %9 = arith.cmpf ogt, %7, %8 : vector<8x1xf32>
    %10 = vector.shape_cast %9 : vector<8x1xi1> to vector<8x1xi1>
    %11 = vector.broadcast %10 : vector<8x1xi1> to vector<8x32xi1>
    %12 = arith.select %11, %4, %6 : vector<8x32xi1>, vector<8x32xf32>
    %13 = arith.mulf %0, %12 : vector<8x32xf32>
    %c0_12 = arith.constant 0 : index
    %c0_13 = arith.constant 0 : index
    %14 = vector.load %arg3[%c0_12, %c0_13] : memref<32x8xf32, #tpu.memory_space<vmem>>, vector<32x8xf32>
    %cst_14 = arith.constant dense<0.000000e+00> : vector<32x32xf32>
    %15 = tpu.matmul %14, %0, %cst_14 {dimension_numbers = #tpu.dot_dimension_numbers<[1], [0], [0], [1], [0, 0, 1, 1], [], []>, precision = #tpu.contract_precision<fp32>} : vector<32x8xf32>, vector<8x32xf32>, vector<32x32xf32> -> vector<32x32xf32>
    %cst_15 = arith.constant dense<0.000000e+00> : vector<32x32xf32>
    %16 = tpu.matmul %2, %1, %cst_15 {dimension_numbers = #tpu.dot_dimension_numbers<[1], [0], [0], [1], [0, 0, 1, 1], [], []>, precision = #tpu.contract_precision<fp32>} : vector<32x8xf32>, vector<8x32xf32>, vector<32x32xf32> -> vector<32x32xf32>
    %17 = arith.mulf %15, %16 : vector<32x32xf32>
    %c0_16 = arith.constant 0 : index
    %c0_17 = arith.constant 0 : index
    %18 = vector.load %arg4[%c0_16, %c0_17] : memref<32x8xf32, #tpu.memory_space<vmem>>, vector<32x8xf32>
    %cst_18 = arith.constant dense<0.000000e+00> : vector<32x32xf32>
    %19 = tpu.matmul %18, %0, %cst_18 {dimension_numbers = #tpu.dot_dimension_numbers<[1], [0], [0], [1], [0, 0, 1, 1], [], []>, precision = #tpu.contract_precision<fp32>} : vector<32x8xf32>, vector<8x32xf32>, vector<32x32xf32> -> vector<32x32xf32>
    %cst_19 = arith.constant dense<0.000000e+00> : vector<32x32xf32>
    %20 = tpu.matmul %2, %12, %cst_19 {dimension_numbers = #tpu.dot_dimension_numbers<[1], [0], [0], [1], [0, 0, 1, 1], [], []>, precision = #tpu.contract_precision<fp32>} : vector<32x8xf32>, vector<8x32xf32>, vector<32x32xf32> -> vector<32x32xf32>
    %21 = arith.mulf %19, %20 : vector<32x32xf32>
    %22 = tpu.concatenate %13, %17, %21 in 0 : vector<8x32xf32>, vector<32x32xf32>, vector<32x32xf32> -> vector<72x32xf32>
    %c0_20 = arith.constant 0 : index
    %c0_21 = arith.constant 0 : index
    %23 = vector.load %arg12[%c0_20, %c0_21] : memref<32x16xf32, #tpu.memory_space<vmem>>, vector<32x16xf32>
    %cst_22 = arith.constant dense<0.000000e+00> : vector<72x16xf32>
    %24 = tpu.matmul %22, %23, %cst_22 {dimension_numbers = #tpu.dot_dimension_numbers<[1], [0], [0], [1], [0, 0, 1, 1], [], []>, precision = #tpu.contract_precision<fp32>} : vector<72x32xf32>, vector<32x16xf32>, vector<72x16xf32> -> vector<72x16xf32>
    %c0_23 = arith.constant 0 : index
    %c0_24 = arith.constant 0 : index
    %25 = vector.load %arg13[%c0_23, %c0_24] : memref<1x16xf32, #tpu.memory_space<vmem>>, vector<1x16xf32>
    %26 = vector.broadcast %25 : vector<1x16xf32> to vector<72x16xf32>
    %27 = arith.addf %24, %26 : vector<72x16xf32>
    %c0_25 = arith.constant 0 : index
    %c0_26 = arith.constant 0 : index
    %28 = vector.load %arg11[%c0_25, %c0_26] : memref<8x16xf32, #tpu.memory_space<vmem>>, vector<8x16xf32>
    %29 = vector.extract_strided_slice %27 {offsets = [0, 0], sizes = [8, 16], strides = [1, 1]} : vector<72x16xf32> to vector<8x16xf32>
    %30 = vector.extract_strided_slice %27 {offsets = [8, 0], sizes = [32, 16], strides = [1, 1]} : vector<72x16xf32> to vector<32x16xf32>
    %31 = vector.extract_strided_slice %27 {offsets = [40, 0], sizes = [32, 16], strides = [1, 1]} : vector<72x16xf32> to vector<32x16xf32>
    %32 = tpu.concatenate %28, %29 in 1 : vector<8x16xf32>, vector<8x16xf32> -> vector<8x32xf32>
    %cst_27 = arith.constant dense<0.000000e+00> : vector<32x32xf32>
    %33 = tpu.matmul %2, %32, %cst_27 {dimension_numbers = #tpu.dot_dimension_numbers<[1], [0], [0], [1], [0, 0, 1, 1], [], []>, precision = #tpu.contract_precision<fp32>} : vector<32x8xf32>, vector<8x32xf32>, vector<32x32xf32> -> vector<32x32xf32>
    %34 = vector.extract_strided_slice %33 {offsets = [0, 0], sizes = [32, 16], strides = [1, 1]} : vector<32x32xf32> to vector<32x16xf32>
    %35 = vector.extract_strided_slice %33 {offsets = [0, 16], sizes = [32, 16], strides = [1, 1]} : vector<32x32xf32> to vector<32x16xf32>
    %36 = arith.mulf %28, %29 : vector<8x16xf32>
    %cst_28 = arith.constant dense<0.000000e+00> : vector<8xf32>
    %37 = vector.multi_reduction <add>, %36, %cst_28 [1] : vector<8x16xf32> to vector<8xf32>
    %38 = vector.shape_cast %37 : vector<8xf32> to vector<8x1xf32>
    %39 = arith.mulf %28, %28 : vector<8x16xf32>
    %cst_29 = arith.constant dense<0.000000e+00> : vector<8xf32>
    %40 = vector.multi_reduction <add>, %39, %cst_29 [1] : vector<8x16xf32> to vector<8xf32>
    %41 = vector.shape_cast %40 : vector<8xf32> to vector<8x1xf32>
    %42 = math.sqrt %41 : vector<8x1xf32>
    %43 = arith.mulf %29, %29 : vector<8x16xf32>
    %cst_30 = arith.constant dense<0.000000e+00> : vector<8xf32>
    %44 = vector.multi_reduction <add>, %43, %cst_30 [1] : vector<8x16xf32> to vector<8xf32>
    %45 = vector.shape_cast %44 : vector<8xf32> to vector<8x1xf32>
    %46 = math.sqrt %45 : vector<8x1xf32>
    %47 = arith.mulf %42, %46 : vector<8x1xf32>
    %cst_31 = arith.constant 9.99999993E-9 : f32
    %48 = vector.broadcast %cst_31 : f32 to vector<8x1xf32>
    %49 = arith.maximumf %47, %48 : vector<8x1xf32>
    %50 = arith.divf %38, %49 : vector<8x1xf32>
    %51 = arith.mulf %34, %30 : vector<32x16xf32>
    %cst_32 = arith.constant dense<0.000000e+00> : vector<32xf32>
    %52 = vector.multi_reduction <add>, %51, %cst_32 [1] : vector<32x16xf32> to vector<32xf32>
    %53 = vector.shape_cast %52 : vector<32xf32> to vector<32x1xf32>
    %54 = arith.mulf %34, %34 : vector<32x16xf32>
    %cst_33 = arith.constant dense<0.000000e+00> : vector<32xf32>
    %55 = vector.multi_reduction <add>, %54, %cst_33 [1] : vector<32x16xf32> to vector<32xf32>
    %56 = vector.shape_cast %55 : vector<32xf32> to vector<32x1xf32>
    %57 = math.sqrt %56 : vector<32x1xf32>
    %58 = arith.mulf %30, %30 : vector<32x16xf32>
    %cst_34 = arith.constant dense<0.000000e+00> : vector<32xf32>
    %59 = vector.multi_reduction <add>, %58, %cst_34 [1] : vector<32x16xf32> to vector<32xf32>
    %60 = vector.shape_cast %59 : vector<32xf32> to vector<32x1xf32>
    %61 = math.sqrt %60 : vector<32x1xf32>
    %62 = arith.mulf %57, %61 : vector<32x1xf32>
    %cst_35 = arith.constant 9.99999993E-9 : f32
    %63 = vector.broadcast %cst_35 : f32 to vector<32x1xf32>
    %64 = arith.maximumf %62, %63 : vector<32x1xf32>
    %65 = arith.divf %53, %64 : vector<32x1xf32>
    %66 = arith.mulf %35, %31 : vector<32x16xf32>
    %cst_36 = arith.constant dense<0.000000e+00> : vector<32xf32>
    %67 = vector.multi_reduction <add>, %66, %cst_36 [1] : vector<32x16xf32> to vector<32xf32>
    %68 = vector.shape_cast %67 : vector<32xf32> to vector<32x1xf32>
    %69 = arith.mulf %35, %35 : vector<32x16xf32>
    %cst_37 = arith.constant dense<0.000000e+00> : vector<32xf32>
    %70 = vector.multi_reduction <add>, %69, %cst_37 [1] : vector<32x16xf32> to vector<32xf32>
    %71 = vector.shape_cast %70 : vector<32xf32> to vector<32x1xf32>
    %72 = math.sqrt %71 : vector<32x1xf32>
    %73 = arith.mulf %31, %31 : vector<32x16xf32>
    %cst_38 = arith.constant dense<0.000000e+00> : vector<32xf32>
    %74 = vector.multi_reduction <add>, %73, %cst_38 [1] : vector<32x16xf32> to vector<32xf32>
    %75 = vector.shape_cast %74 : vector<32xf32> to vector<32x1xf32>
    %76 = math.sqrt %75 : vector<32x1xf32>
    %77 = arith.mulf %72, %76 : vector<32x1xf32>
    %cst_39 = arith.constant 9.99999993E-9 : f32
    %78 = vector.broadcast %cst_39 : f32 to vector<32x1xf32>
    %79 = arith.maximumf %77, %78 : vector<32x1xf32>
    %80 = arith.divf %68, %79 : vector<32x1xf32>
    %c0_40 = arith.constant 0 : index
    %c0_41 = arith.constant 0 : index
    %81 = vector.load %arg6[%c0_40, %c0_41] : memref<8x32xf32, #tpu.memory_space<vmem>>, vector<8x32xf32>
    %c0_42 = arith.constant 0 : index
    %c0_43 = arith.constant 0 : index
    %82 = vector.load %arg7[%c0_42, %c0_43] : memref<32x4xf32, #tpu.memory_space<vmem>>, vector<32x4xf32>
    %83 = vector.broadcast %65 : vector<32x1xf32> to vector<32x4xf32>
    %84 = arith.mulf %82, %83 : vector<32x4xf32>
    %cst_44 = arith.constant dense<0.000000e+00> : vector<8x4xf32>
    %85 = tpu.matmul %81, %84, %cst_44 {dimension_numbers = #tpu.dot_dimension_numbers<[1], [0], [0], [1], [0, 0, 1, 1], [], []>, precision = #tpu.contract_precision<fp32>} : vector<8x32xf32>, vector<32x4xf32>, vector<8x4xf32> -> vector<8x4xf32>
    %c0_45 = arith.constant 0 : index
    %c0_46 = arith.constant 0 : index
    %86 = vector.load %arg6[%c0_45, %c0_46] : memref<8x32xf32, #tpu.memory_space<vmem>>, vector<8x32xf32>
    %c0_47 = arith.constant 0 : index
    %c0_48 = arith.constant 0 : index
    %87 = vector.load %arg7[%c0_47, %c0_48] : memref<32x4xf32, #tpu.memory_space<vmem>>, vector<32x4xf32>
    %88 = vector.broadcast %80 : vector<32x1xf32> to vector<32x4xf32>
    %89 = arith.mulf %87, %88 : vector<32x4xf32>
    %cst_49 = arith.constant dense<0.000000e+00> : vector<8x4xf32>
    %90 = tpu.matmul %86, %89, %cst_49 {dimension_numbers = #tpu.dot_dimension_numbers<[1], [0], [0], [1], [0, 0, 1, 1], [], []>, precision = #tpu.contract_precision<fp32>} : vector<8x32xf32>, vector<32x4xf32>, vector<8x4xf32> -> vector<8x4xf32>
    %91 = tpu.concatenate %50, %85, %90 in 1 : vector<8x1xf32>, vector<8x4xf32>, vector<8x4xf32> -> vector<8x9xf32>
    %cst_50 = arith.constant 1.000000e+01 : f32
    %92 = vector.broadcast %cst_50 : f32 to vector<8x9xf32>
    %93 = arith.mulf %91, %92 : vector<8x9xf32>
    %94 = math.exp %93 : vector<8x9xf32>
    %cst_51 = arith.constant dense<0xFF800000> : vector<8xf32>
    %95 = vector.multi_reduction <maximumf>, %94, %cst_51 [1] : vector<8x9xf32> to vector<8xf32>
    %96 = vector.shape_cast %95 : vector<8xf32> to vector<8x1xf32>
    %97 = vector.broadcast %96 : vector<8x1xf32> to vector<8x9xf32>
    %98 = arith.subf %94, %97 : vector<8x9xf32>
    %99 = math.exp %98 : vector<8x9xf32>
    %cst_52 = arith.constant dense<0.000000e+00> : vector<8xf32>
    %100 = vector.multi_reduction <add>, %99, %cst_52 [1] : vector<8x9xf32> to vector<8xf32>
    %101 = vector.shape_cast %100 : vector<8xf32> to vector<8x1xf32>
    %102 = vector.broadcast %101 : vector<8x1xf32> to vector<8x9xf32>
    %103 = arith.divf %99, %102 : vector<8x9xf32>
    %cst_53 = arith.constant dense<0xFF800000> : vector<8xf32>
    %104 = vector.multi_reduction <maximumf>, %103, %cst_53 [1] : vector<8x9xf32> to vector<8xf32>
    %105 = vector.shape_cast %104 : vector<8xf32> to vector<8x1xf32>
    %106 = vector.broadcast %105 : vector<8x1xf32> to vector<8x9xf32>
    %107 = arith.subf %103, %106 : vector<8x9xf32>
    %108 = math.exp %107 : vector<8x9xf32>
    %cst_54 = arith.constant dense<0.000000e+00> : vector<8xf32>
    %109 = vector.multi_reduction <add>, %108, %cst_54 [1] : vector<8x9xf32> to vector<8xf32>
    %110 = vector.shape_cast %109 : vector<8xf32> to vector<8x1xf32>
    %111 = math.log %110 : vector<8x1xf32>
    %112 = arith.addf %111, %105 : vector<8x1xf32>
    %113 = vector.extract_strided_slice %103 {offsets = [0, 0], sizes = [8, 1], strides = [1, 1]} : vector<8x9xf32> to vector<8x1xf32>
    %114 = arith.subf %112, %113 : vector<8x1xf32>
    %cst_55 = arith.constant dense<0.000000e+00> : vector<1xf32>
    %115 = vector.multi_reduction <add>, %114, %cst_55 [0] : vector<8x1xf32> to vector<1xf32>
    %116 = vector.shape_cast %115 : vector<1xf32> to vector<1x1xf32>
    %cst_56 = arith.constant 1.250000e-01 : f32
    %117 = vector.broadcast %cst_56 : f32 to vector<1x1xf32>
    %118 = arith.mulf %116, %117 : vector<1x1xf32>
    %c0_57 = arith.constant 0 : index
    %c0_58 = arith.constant 0 : index
    %119 = vector.load %arg14[%c0_57, %c0_58] : memref<1x1xf32, #tpu.memory_space<vmem>>, vector<1x1xf32>
    tpu.vector_store %arg14[%c0_57, %c0_58], %118 {strides = array<i32>} : memref<1x1xf32, #tpu.memory_space<vmem>>, vector<1x1xf32>,
    return
  }
  func.func @transform_0(%arg0: i32) -> (i32, i32) {
    %c0_i32 = arith.constant 0 : i32
    %c0_i32_0 = arith.constant 0 : i32
    %c0_i32_1 = arith.constant 0 : i32
    return %c0_i32, %c0_i32_0 : i32, i32
  }
  func.func @transform_1(%arg0: i32) -> (i32, i32) {
    %c0_i32 = arith.constant 0 : i32
    %c0_i32_0 = arith.constant 0 : i32
    %c0_i32_1 = arith.constant 0 : i32
    return %c0_i32, %c0_i32_0 : i32, i32
  }
  func.func @transform_2(%arg0: i32) -> (i32, i32) {
    %c0_i32 = arith.constant 0 : i32
    %c0_i32_0 = arith.constant 0 : i32
    %c0_i32_1 = arith.constant 0 : i32
    return %c0_i32, %c0_i32_0 : i32, i32
  }
  func.func @transform_3(%arg0: i32) -> (i32, i32) {
    %c0_i32 = arith.constant 0 : i32
    %c0_i32_0 = arith.constant 0 : i32
    %c0_i32_1 = arith.constant 0 : i32
    return %c0_i32, %c0_i32_0 : i32, i32
  }
  func.func @transform_4(%arg0: i32) -> (i32, i32) {
    %c0_i32 = arith.constant 0 : i32
    %c0_i32_0 = arith.constant 0 : i32
    %c0_i32_1 = arith.constant 0 : i32
    return %c0_i32, %c0_i32_0 : i32, i32
  }
  func.func @transform_5(%arg0: i32) -> (i32, i32) {
    %c0_i32 = arith.constant 0 : i32
    %c0_i32_0 = arith.constant 0 : i32
    %c0_i32_1 = arith.constant 0 : i32
    return %c0_i32, %c0_i32_0 : i32, i32
  }
  func.func @transform_6(%arg0: i32) -> (i32, i32) {
    %c0_i32 = arith.constant 0 : i32
    %c0_i32_0 = arith.constant 0 : i32
    %c0_i32_1 = arith.constant 0 : i32
    return %c0_i32, %c0_i32_0 : i32, i32
  }
  func.func @transform_7(%arg0: i32) -> (i32, i32) {
    %c0_i32 = arith.constant 0 : i32
    %c0_i32_0 = arith.constant 0 : i32
    %c0_i32_1 = arith.constant 0 : i32
    return %c0_i32, %c0_i32_0 : i32, i32
  }
  func.func @transform_8(%arg0: i32) -> (i32, i32) {
    %c0_i32 = arith.constant 0 : i32
    %c0_i32_0 = arith.constant 0 : i32
    %c0_i32_1 = arith.constant 0 : i32
    return %c0_i32, %c0_i32_0 : i32, i32
  }
  func.func @transform_9(%arg0: i32) -> (i32, i32) {
    %c0_i32 = arith.constant 0 : i32
    %c0_i32_0 = arith.constant 0 : i32
    %c0_i32_1 = arith.constant 0 : i32
    return %c0_i32, %c0_i32_0 : i32, i32
  }
  func.func @transform_10(%arg0: i32) -> (i32, i32) {
    %c0_i32 = arith.constant 0 : i32
    %c0_i32_0 = arith.constant 0 : i32
    %c0_i32_1 = arith.constant 0 : i32
    return %c0_i32, %c0_i32_0 : i32, i32
  }
  func.func @transform_11(%arg0: i32) -> (i32, i32) {
    %c0_i32 = arith.constant 0 : i32
    %c0_i32_0 = arith.constant 0 : i32
    %c0_i32_1 = arith.constant 0 : i32
    return %c0_i32, %c0_i32_0 : i32, i32
  }
  func.func @transform_12(%arg0: i32) -> (i32, i32) {
    %c0_i32 = arith.constant 0 : i32
    %c0_i32_0 = arith.constant 0 : i32
    %c0_i32_1 = arith.constant 0 : i32
    return %c0_i32, %c0_i32_0 : i32, i32
  }
  func.func @transform_13(%arg0: i32) -> (i32, i32) {
    %c0_i32 = arith.constant 0 : i32
    %c0_i32_0 = arith.constant 0 : i32
    %c0_i32_1 = arith.constant 0 : i32
    return %c0_i32, %c0_i32_0 : i32, i32
  }
}

</mosaic_0001>

<bundles_post_ra>
// kernel: tpu_custom_call.1
= control target key start
LH: loop header
LB: loop body
LE: loop exit
PB: predicated region body
PF: predicated region fallthrough
CT: control target
= control target key end

     0   :  { %vm52_vm0 = vcmask 64512   ;;  %v8051_v2 = vmov 0.0   ;;  %vm6688_vm1 = vmmov 0   ;;  %v6689_v14 = vmov 0   ;;  %s8031_s0 = inlined_call_operand.vmem [shape: f32[8,1], index: 0, kind: input, shape index: {}]   ;;  %s8032_s1 = inlined_call_operand.vmem [shape: f32[8,8], index: 1, kind: input, shape index: {}]   ;;  %s8033_s2 = inlined_call_operand.vmem [shape: f32[32,8], index: 2, kind: input, shape index: {}]   ;;  %s8034_s3 = inlined_call_operand.vmem [shape: f32[32,8], index: 3, kind: input, shape index: {}]   ;;  %s8035_s4 = inlined_call_operand.vmem [shape: f32[32,8], index: 4, kind: input, shape index: {}]   ;;  %s8036_s5 = inlined_call_operand.vmem [shape: f32[8,32], index: 5, kind: input, shape index: {}]   ;;  %s8037_s6 = inlined_call_operand.vmem [shape: f32[32,4], index: 6, kind: input, shape index: {}]   ;;  %s8038_s7 = inlined_call_operand.vmem [shape: f32[8,32], index: 7, kind: input, shape index: {}]   ;;  %s8039_s8 = inlined_call_operand.vmem [shape: f32[8,32], index: 8, kind: input, shape index: {}]   ;;  %s8040_s9 = inlined_call_operand.vmem [shape: f32[8,32], index: 9, kind: input, shape index: {}]   ;;  %s8041_s10 = inlined_call_operand.vmem [shape: f32[8,16], index: 10, kind: input, shape index: {}]   ;;  %s8042_s11 = inlined_call_operand.vmem [shape: f32[32,16], index: 11, kind: input, shape index: {}]   ;;  %s8043_s12 = inlined_call_operand.vmem [shape: f32[1,16], index: 12, kind: input, shape index: {}]   ;;  %s8044_s13 = inlined_call_operand.hbm [shape: f32[1,1], index: 13, kind: output, shape index: {}]  }
   0x1   :  { %v6768_v0 = vld [vmem:[%s8039_s8] sm:$0xff]  ;;  %5980 = vmatprep.subr.mxu0 %v8051_v2  ;;  %5985 = vmatprep.subr.mxu1 %v8051_v2  ;;  %v514_v11 = vld [vmem:[%s8033_s2 + $0x8] sm:$0xff]  ;;  %v515_v12 = vld [vmem:[%s8033_s2 + $0x10] sm:$0xff] }
   0x2   :  { %v51_v1 = vld [vmem:[%s8032_s1] sm:$0xff]  ;;  %v6776_v3 = vand.u32 4294901760, %v6768_v0  ;;  %5982 = vmatprep.mubr.msk.f32.mxu0 %vm6688_vm1, %v8051_v2  ;;  %5987 = vmatprep.mubr.msk.f32.mxu1 %vm6688_vm1, %v8051_v2  ;;  %v521_v17 = vsel %vm52_vm0, %v514_v11, 0  ;;  %v516_v18 = vld [vmem:[%s8033_s2 + $0x18] sm:$0xff]  ;;  %v524_v21 = vsel %vm52_vm0, %v515_v12, 0 }
   0x3   :  { %v54_v4 = vsel %vm52_vm0, %v51_v1, 0  ;;  %v504_v5 = vld [vmem:[%s8031_s0] sm:$0xff]  ;;  %6600 = vset.pattern.permute.xlu0 %v6689_v14  ;;  %v6819_v20 = vand.u32 4294901760, %v521_v17  ;;  %v6828_v24 = vand.u32 4294901760, %v524_v21  ;;  %v527_v25 = vsel %vm52_vm0, %v516_v18, 0 }
   0x4   :  { %v6785_v6 = vld [vmem:[%s8038_s7] sm:$0xff]  ;;  %v6794_v8 = vand.u32 4294901760, %v54_v4  ;;  %vm505_vm2 = vcmp.gt.f32.partialorder %v504_v5, 0.5  ;;  %5981 = vmatpush3.msra.mxu0 %v6776_v3  ;;  %v6809_v13 = vsub.f32 %v6768_v0, %v6776_v3 }
   0x5   :  { %v513_v7 = vld [vmem:[%s8033_s2] sm:$0xff]  ;;  %v6797_v9 = vand.u32 4294901760, %v6785_v6  ;;  %v506_v15 = vsel %vm505_vm2, 1, %v6689_v14  ;;  %5990 = vmatprep.subr.mxu0 %v8051_v2 }
   0x6   :  { %v518_v10 = vsel %vm52_vm0, %v513_v7, 0  ;;  %v123_v19 = vsub.f32 %v54_v4, %v6794_v8  ;;  %508 = vperm.xlu0 %6600, %v506_v15   ;;  %v6823_v22 = vand.u32 4294901760, %v6809_v13 }
   0x7   :  { %v6811_v16 = vand.u32 4294901760, %v518_v10  ;;  %v6833_v27 = vsub.f32 %v6785_v6, %v6797_v9 }
   0x8   :  { %v124_v26 = vand.u32 4294901760, %v123_v19 }
   0x9   :  { %v6826_v23 = vsub.f32 %v518_v10, %v6811_v16 }
   0xa   :  { %18 = vsyncpa [#allocation3], 0  ;;  %v166_v28 = vsub.f32 %v6809_v13, %v6823_v22  ;;  %v125_v29 = vsub.f32 %v123_v19, %v124_v26  ;;  %v6838_v30 = vsub.f32 %v521_v17, %v6819_v20  ;;  %v6840_v31 = vand.u32 4294901760, %v527_v25  ;;  %v47_v47 = vld [vmem:[%s8035_s4] sm:$0xff]  ;;  %v48_v52 = vld [vmem:[%s8035_s4 + $0x8] sm:$0xff]  ;;  %s6693_s8 = smov 5  }
   0xb   :  { %v597_v33 = vand.u32 4294901760, %v6826_v23  ;;  %v6846_v34 = vsub.f32 %v524_v21, %v6828_v24  ;;  %v6849_v36 = vand.u32 4294901760, %v6833_v27  ;;  %v1105_v51 = vsel %vm52_vm0, %v47_v47, 0  ;;  %v49_v53 = vld [vmem:[%s8035_s4 + $0x10] sm:$0xff]  ;;  %v50_v58 = vld [vmem:[%s8035_s4 + $0x18] sm:$0xff]  ;;  %v1695_v17 = vld [vmem:[%s8034_s3] sm:$0xff] }
   0xc   :  { %v6842_v32 = vand.u32 4294901760, %v166_v28  ;;  %v126_v35 = vand.u32 4294901760, %v125_v29  ;;  %v607_v37 = vand.u32 4294901760, %v6838_v30  ;;  %v6855_v38 = vsub.f32 %v527_v25, %v6840_v31  ;;  %s6694_s14 = smov [#allocation2]  }
   0xd   :  { %v598_v39 = vsub.f32 %v6826_v23, %v597_v33  ;;  %v617_v40 = vand.u32 4294901760, %v6846_v34  ;;  %v669_v41 = vsub.f32 %v6833_v27, %v6849_v36  ;;  %v6902_v55 = vand.u32 4294901760, %v1105_v51  ;;  %s5671_s1 = sshll.u32 %s6694_s14, 4  ;;  %s5672_s1 = int_to_ptr.vmem [resolvable:$true] %s5671_s1 }
   0xe   :  { %5986 = vmatpush3.msra.mxu1 %v6842_v32  ;;  %5983 = vmatmul.mubr.f32.vlgmr.msra.gmra.mxu0 %v126_v35  ;;  %v608_v42 = vsub.f32 %v6838_v30, %v607_v37  ;;  %v627_v43 = vand.u32 4294901760, %v6855_v38  ;;  %v1108_v56 = vsel %vm52_vm0, %v48_v52, 0  ;;  %v1111_v57 = vsel %vm52_vm0, %v49_v53, 0  ;;  %s6669_s15 = scalar_lea.vmem %s5672_s1, 32  ;;  %p6670_p1 = scmp.lt.s32.totalorder %s5672_s1, %s5672_s1 }
   0xf   :  { %5988 = vmatmul.mubr.f32.vlgmr.msra.gmra.mxu1 %v6794_v8  ;;  %5995 = vmatprep.subr.mxu1 %v8051_v2  ;;  %v599_v44 = vand.u32 4294901760, %v598_v39  ;;  %v618_v45 = vsub.f32 %v6846_v34, %v617_v40  ;;  %v6877_v46 = vand.u32 4294901760, %v669_v41  ;;  %8086 = vst [vmem:[#allocation5_spill] sm:$0xff] %v6902_v55  ;;  %v6914_v59 = vand.u32 4294901760, %v1108_v56 }
  0x10   :  { %5991 = vmatpush3.msra.mxu0 %v6809_v13  ;;  %5992 = vmatprep.mubr.msk.f32.mxu0 %vm6688_vm1, %v8051_v2  ;;  %v609_v48 = vand.u32 4294901760, %v608_v42  ;;  %v628_v49 = vsub.f32 %v6855_v38, %v627_v43  ;;  %v6918_v60 = vsub.f32 %v1105_v51, %v6902_v55  ;;  %v6920_v61 = vand.u32 4294901760, %v1111_v57 }
  0x11   :  { %5996 = vmatpush3.msra.mxu1 %v6776_v3  ;;  %5997 = vmatprep.mubr.msk.f32.mxu1 %vm6688_vm1, %v8051_v2  ;;  %v619_v50 = vand.u32 4294901760, %v618_v45  ;;  %8087 = vst [vmem:[#allocation6_spill] sm:$0xff] %v6914_v59  ;;  %v1114_v62 = vsel %vm52_vm0, %v50_v58, 0  ;;  %v6926_v63 = vsub.f32 %v1108_v56, %v6914_v59  ;;  %v1700_v21 = vsel %vm52_vm0, %v1695_v17, 0 }
  0x12   :  { %6000 = vmatprep.subr.mxu0 %v8051_v2  ;;  %5993 = vmatmul.mubr.f32.vlgmr.msra.gmra.mxu0 %v123_v19  ;;  %v629_v54 = vand.u32 4294901760, %v628_v49  ;;  %8088 = vst [vmem:[#allocation7_spill] sm:$0xff] %v6918_v60  ;;  %8089 = vst [vmem:[#allocation8_spill] sm:$0xff] %v6920_v61  ;;  %v6928_v1 = vand.u32 4294901760, %v1114_v62  ;;  %v6932_v4 = vand.u32 4294901760, %v6918_v60  ;;  %v6935_v5 = vsub.f32 %v1111_v57, %v6920_v61  ;;  %v502_v57 = vld [vmem:[%s8040_s9] sm:$0xff] }
  0x13   :  { %5998 = vmatmul.mubr.f32.vlgmr.msra.gmra.mxu1 %v124_v26  ;;  %6005 = vmatprep.subr.mxu1 %v8051_v2  ;;  %8090 = vst [vmem:[#allocation9_spill] sm:$0xff] %v6926_v63  ;;  %v6943_v7 = vand.u32 4294901760, %v6926_v63  ;;  %v6998_v26 = vand.u32 4294901760, %v1700_v21  ;;  %v503_v17 = vmul.f32 %v502_v57, %v6768_v0  ;;  %vm2876_vm4 = vcmask 261120  }
  0x14   :  { %6001 = vmatpush3.msra.mxu0 %v6823_v22  ;;  %6002 = vmatprep.mubr.msk.f32.mxu0 %vm6688_vm1, %v8051_v2  ;;  %8091 = vst [vmem:[#allocation10_spill] sm:$0xff] %v6928_v1  ;;  %8092 = vst [vmem:[#allocation11_spill] sm:$0xff] %v6932_v4  ;;  %v1185_v10 = vsub.f32 %v6918_v60, %v6932_v4  ;;  %v6953_v11 = vand.u32 4294901760, %v6935_v5  ;;  %vm3738_vm5 = vcmask 130048  }
  0x15   :  { %6006 = vmatpush3.msra.mxu1 %v6776_v3  ;;  %6007 = vmatprep.mubr.msk.f32.mxu1 %vm6688_vm1, %v8051_v2  ;;  %8093 = vst [vmem:[#allocation12_spill] sm:$0xff] %v6935_v5  ;;  %8094 = vst [vmem:[#allocation13_spill] sm:$0xff] %v6943_v7  ;;  %v1195_v12 = vsub.f32 %v6926_v63, %v6943_v7 }
  0x16   :  { %6010 = vmatprep.subr.mxu0 %v6797_v9  ;;  %6003 = vmatmul.mubr.f32.vlgmr.msra.gmra.mxu0 %v6794_v8  ;;  %8096 = vst [vmem:[#allocation15_spill] sm:$0xff] %v6953_v11  ;;  %v6964_v15 = vand.u32 4294901760, %v1185_v10 }
  0x17   :  { %6008 = vmatmul.mubr.f32.vlgmr.msra.gmra.mxu1 %v6794_v8  ;;  %6011 = vmatpush3.msra.mxu0 %v6797_v9  ;;  %v6946_v8 = vsub.f32 %v1114_v62, %v6928_v1  ;;  %v6977_v18 = vand.u32 4294901760, %v1195_v12 }
  0x18   :  { %6012 = vmatprep.mubr.f32.mxu0 %v599_v44  ;;  %6018 = vmatprep.subr.mxu1 %v6877_v46  ;;  %8098 = vst [vmem:[#allocation17_spill] sm:$0xff] %v6964_v15 }
  0x19   :  { %6020 = vmatprep.mubr.f32.mxu1 %v6811_v16  ;;  %6019 = vmatpush3.msra.mxu1 %v6877_v46  ;;  %8095 = vst [vmem:[#allocation14_spill] sm:$0xff] %v6946_v8  ;;  %v6960_v14 = vand.u32 4294901760, %v6946_v8  ;;  %8099 = vst [vmem:[#allocation18_spill] sm:$0xff] %v6977_v18 }
  0x1a   :  { %6026 = vmatprep.subr.mxu0 %v6833_v27  ;;  %6013 = vmatmul.mubr.f32.vlgmr.msra.gmra.mxu0 %v609_v48 }
  0x1b   :  { %6021 = vmatmul.mubr.f32.vlgmr.msra.gmra.mxu1 %v6819_v20  ;;  %6015 = vmatprep.mubr.f32.mxu0 %v619_v50  ;;  %8097 = vst [vmem:[#allocation16_spill] sm:$0xff] %v6960_v14  ;;  %v1215_v19 = vsub.f32 %v6946_v8, %v6960_v14 }
  0x1c   :  { %6023 = vmatprep.mubr.f32.mxu1 %v6828_v24  ;;  %6027 = vmatpush3.msra.mxu0 %v6833_v27 }
  0x1d   :  { %6034 = vmatprep.subr.mxu1 %v6797_v9  ;;  %6042 = vmatprep.subr.mxu0 %v6849_v36  ;;  %v6994_v25 = vand.u32 4294901760, %v1215_v19 }
  0x1e   :  { %6035 = vmatpush3.msra.mxu1 %v6797_v9  ;;  %6016 = vmatmul.mubr.f32.gmra.mxu0 %v629_v54 }
  0x1f   :  { %6024 = vmatmul.mubr.f32.gmra.mxu1 %v6840_v31  ;;  %6028 = vmatprep.mubr.f32.mxu0 %v6826_v23  ;;  %v1696_v23 = vld [vmem:[%s8034_s3 + $0x8] sm:$0xff]  ;;  %8101 = vst [vmem:[#allocation20_spill] sm:$0xff] %v6994_v25 }
  0x20   :  { %6036 = vmatprep.mubr.f32.mxu1 %v597_v33  ;;  %6050 = vmatprep.subr.mxu1 %v6797_v9  ;;  %v1703_v28 = vsel %vm52_vm0, %v1696_v23, 0 }
  0x22   :  { %6029 = vmatmul.mubr.f32.vlgmr.msra.gmra.mxu0 %v6838_v30  ;;  %v1698_v30 = vld [vmem:[%s8034_s3 + $0x18] sm:$0xff] }
  0x23   :  { %6037 = vmatmul.mubr.f32.vlgmr.msra.gmra.mxu1 %v607_v37  ;;  %6031 = vmatprep.mubr.f32.mxu0 %v6846_v34  ;;  %v1709_v33 = vsel %vm52_vm0, %v1698_v30, 0 }
  0x24   :  { %6039 = vmatprep.mubr.f32.mxu1 %v617_v40  ;;  %6043 = vmatpush3.msra.mxu0 %v6849_v36  ;;  %v7022_v35 = vand.u32 4294901760, %v1709_v33 }
  0x25   :  { %6051 = vmatpush3.msra.mxu1 %v6797_v9  ;;  %6058 = vmatprep.subr.mxu0 %v6776_v3 }
  0x26   :  { %6066 = vmatprep.subr.mxu1 %v6842_v32  ;;  %6032 = vmatmul.mubr.f32.gmra.mxu0 %v6855_v38  ;;  %v1808_v40 = vsub.f32 %v1709_v33, %v7022_v35 }
  0x27   :  { %6040 = vmatmul.mubr.f32.gmra.mxu1 %v627_v43  ;;  %6044 = vmatprep.mubr.f32.mxu0 %v6811_v16 }
  0x28   :  { %6052 = vmatprep.mubr.f32.mxu1 %v6811_v16  ;;  %v1205_v16 = vsub.f32 %v6935_v5, %v6953_v11 }
  0x2a   :  { %6045 = vmatmul.mubr.f32.vlgmr.msra.gmra.mxu0 %v6819_v20 }
  0x2b   :  { %6053 = vmatmul.mubr.f32.vlgmr.msra.gmra.mxu1 %v6819_v20  ;;  %6047 = vmatprep.mubr.f32.mxu0 %v6828_v24  ;;  %v6983_v20 = vand.u32 4294901760, %v1205_v16 }
  0x2c   :  { %6055 = vmatprep.mubr.f32.mxu1 %v6828_v24  ;;  %6059 = vmatpush3.msra.mxu0 %v6776_v3  ;;  %v1697_v24 = vld [vmem:[%s8034_s3 + $0x10] sm:$0xff]  ;;  %s6665_s3 = scalar_lea.vmem %s5672_s1, 16 }
  0x2d   :  { %6067 = vmatpush3.msra.mxu1 %v6842_v32  ;;  %6074 = vmatprep.subr.mxu0 %v6809_v13  ;;  %8100 = vst [vmem:[#allocation19_spill] sm:$0xff] %v6983_v20  ;;  %v1706_v29 = vsel %vm52_vm0, %v1697_v24, 0  ;;  %p6666_p0 = scmp.ne.s32.totalorder %s5672_s1, %s6665_s3  ;;  %p6671_p2 = scmp.lt.s32.totalorder %s6669_s15, %s6665_s3 }
  0x2e   :  { %6082 = vmatprep.subr.mxu1 %v6776_v3  ;;  %6048 = vmatmul.mubr.f32.gmra.mxu0 %v6840_v31  ;;  %v7016_v32 = vand.u32 4294901760, %v1706_v29 }
  0x2f   :  { %6056 = vmatmul.mubr.f32.gmra.mxu1 %v6840_v31  ;;  %6060 = vmatprep.mubr.f32.mxu0 %v6964_v15  ;;  %v7011_v31 = vand.u32 4294901760, %v1703_v28  ;;  %p6672_p3 = por %p6671_p2, %p6670_p1 }
  0x30   :  { %6068 = vmatprep.mubr.f32.mxu1 %v6902_v55  ;;  %v1798_v38 = vsub.f32 %v1706_v29, %v7016_v32 }
  0x31   :  { %v1788_v34 = vsub.f32 %v1703_v28, %v7011_v31  ;;  %p6673_p4 = pnand %p6672_p3, %p6666_p0 }
  0x32   :  { %6061 = vmatmul.mubr.f32.vlgmr.msra.gmra.mxu0 %v6977_v18  ;;  %v1799_v42 = vand.u32 4294901760, %v1798_v38 }
  0x33   :  { %6069 = vmatmul.mubr.f32.vlgmr.msra.gmra.mxu1 %v6914_v59  ;;  %6063 = vmatprep.mubr.f32.mxu0 %v6983_v20  ;;  %v1789_v39 = vand.u32 4294901760, %v1788_v34 }
  0x34   :  { %6071 = vmatprep.mubr.f32.mxu1 %v6920_v61  ;;  %6075 = vmatpush3.msra.mxu0 %v6809_v13  ;;  %v1778_v13 = vsub.f32 %v1700_v21, %v6998_v26  ;;  %v1800_v44 = vsub.f32 %v1798_v38, %v1799_v42 }
  0x35   :  { %6083 = vmatpush3.msra.mxu1 %v6776_v3  ;;  %6090 = vmatprep.subr.mxu0 %v6823_v22 }
  0x36   :  { %6098 = vmatprep.subr.mxu1 %v6776_v3  ;;  %6064 = vmatmul.mubr.f32.gmra.mxu0 %v6994_v25  ;;  %v1779_v37 = vand.u32 4294901760, %v1778_v13  ;;  %v1801_v48 = vand.u32 4294901760, %v1800_v44 }
  0x37   :  { %6072 = vmatmul.mubr.f32.gmra.mxu1 %v6928_v1  ;;  %6076 = vmatprep.mubr.f32.mxu0 %v6918_v60 }
  0x38   :  { %6084 = vmatprep.mubr.f32.mxu1 %v6932_v4  ;;  %v1780_v41 = vsub.f32 %v1778_v13, %v1779_v37 }
  0x3a   :  { %6077 = vmatmul.mubr.f32.vlgmr.msra.gmra.mxu0 %v6926_v63  ;;  %v1781_v43 = vand.u32 4294901760, %v1780_v41  ;;  %v2867_v41 = vld [vmem:[%s8042_s11 + $0x10] sm:$0xff] }
  0x3b   :  { %6085 = vmatmul.mubr.f32.vlgmr.msra.gmra.mxu1 %v6943_v7  ;;  %6079 = vmatprep.mubr.f32.mxu0 %v6935_v5 }
  0x3c   :  { %6087 = vmatprep.mubr.f32.mxu1 %v6953_v11  ;;  %6091 = vmatpush3.msra.mxu0 %v6823_v22  ;;  %v1809_v22 = vand.u32 4294901760, %v1808_v40 }
  0x3d   :  { %6099 = vmatpush3.msra.mxu1 %v6776_v3  ;;  %6106 = vmatprep.subr.mxu0 %v6797_v9  ;;  %v1790_v3 = vsub.f32 %v1788_v34, %v1789_v39 }
  0x3e   :  { %6114 = vmatprep.subr.mxu1 %v6877_v46  ;;  %6080 = vmatmul.mubr.f32.gmra.mxu0 %v6946_v8  ;;  %v1810_v47 = vsub.f32 %v1808_v40, %v1809_v22 }
  0x3f   :  { %6088 = vmatmul.mubr.f32.gmra.mxu1 %v6960_v14  ;;  %6092 = vmatprep.mubr.f32.mxu0 %v6902_v55  ;;  %v1791_v45 = vand.u32 4294901760, %v1790_v3 }
  0x40   :  { %6100 = vmatprep.mubr.f32.mxu1 %v6902_v55  ;;  %v1811_v49 = vand.u32 4294901760, %v1810_v47  ;;  %v2866_v47 = vld [vmem:[%s8042_s11 + $0x8] sm:$0xff] }
  0x42   :  { %6093 = vmatmul.mubr.f32.vlgmr.msra.gmra.mxu0 %v6914_v59 }
  0x43   :  { %6101 = vmatmul.mubr.f32.vlgmr.msra.gmra.mxu1 %v6914_v59  ;;  %6095 = vmatprep.mubr.f32.mxu0 %v6920_v61 }
  0x44   :  { %6103 = vmatprep.mubr.f32.mxu1 %v6920_v61  ;;  %6107 = vmatpush3.msra.mxu0 %v6797_v9 }
  0x45   :  { %6115 = vmatpush3.msra.mxu1 %v6877_v46  ;;  %6122 = vmatprep.subr.mxu0 %v6833_v27 }
  0x46   :  { %6130 = vmatprep.subr.mxu1 %v6797_v9  ;;  %6096 = vmatmul.mubr.f32.gmra.mxu0 %v6928_v1 }
  0x47   :  { %6104 = vmatmul.mubr.f32.gmra.mxu1 %v6928_v1  ;;  %6108 = vmatprep.mubr.f32.mxu0 %v1781_v43 }
  0x48   :  { %6116 = vmatprep.mubr.f32.mxu1 %v6998_v26 }
  0x4a   :  { %6109 = vmatmul.mubr.f32.vlgmr.msra.gmra.mxu0 %v1791_v45  ;;  %v7113_v45 = vand.u32 4294901760, %v2867_v41 }
  0x4b   :  { %6117 = vmatmul.mubr.f32.vlgmr.msra.gmra.mxu1 %v7011_v31  ;;  %6111 = vmatprep.mubr.f32.mxu0 %v1801_v48 }
  0x4c   :  { %6119 = vmatprep.mubr.f32.mxu1 %v7016_v32  ;;  %6123 = vmatpush3.msra.mxu0 %v6833_v27 }
  0x4d   :  { %6131 = vmatpush3.msra.mxu1 %v6797_v9  ;;  %6138 = vmatprep.subr.mxu0 %v6849_v36 }
  0x4e   :  { %6146 = vmatprep.subr.mxu1 %v6797_v9  ;;  %6112 = vmatmul.mubr.f32.gmra.mxu0 %v1811_v49 }
  0x4f   :  { %6120 = vmatmul.mubr.f32.gmra.mxu1 %v7022_v35  ;;  %6124 = vmatprep.mubr.f32.mxu0 %v1778_v13 }
  0x50   :  { %6132 = vmatprep.mubr.f32.mxu1 %v1779_v37 }
  0x52   :  { %6125 = vmatmul.mubr.f32.vlgmr.msra.gmra.mxu0 %v1788_v34 }
  0x53   :  { %6133 = vmatmul.mubr.f32.vlgmr.msra.gmra.mxu1 %v1789_v39  ;;  %6127 = vmatprep.mubr.f32.mxu0 %v1798_v38  ;;  %v2868_v39 = vld [vmem:[%s8042_s11 + $0x18] sm:$0xff] }
  0x54   :  { %6135 = vmatprep.mubr.f32.mxu1 %v1799_v42  ;;  %6139 = vmatpush3.msra.mxu0 %v6849_v36  ;;  %v7111_v44 = vand.u32 4294901760, %v2868_v39 }
  0x55   :  { %6147 = vmatpush3.msra.mxu1 %v6797_v9 }
  0x56   :  { %6128 = vmatmul.mubr.f32.gmra.mxu0 %v1808_v40 }
  0x57   :  { %6136 = vmatmul.mubr.f32.gmra.mxu1 %v1809_v22  ;;  %6140 = vmatprep.mubr.f32.mxu0 %v6998_v26 }
  0x58   :  { %6148 = vmatprep.mubr.f32.mxu1 %v6998_v26 }
  0x5a   :  { %6141 = vmatmul.mubr.f32.vlgmr.msra.gmra.mxu0 %v7011_v31 }
  0x5b   :  { %6149 = vmatmul.mubr.f32.vlgmr.msra.gmra.mxu1 %v7011_v31  ;;  %6143 = vmatprep.mubr.f32.mxu0 %v7016_v32 }
  0x5c   :  { %6151 = vmatprep.mubr.f32.mxu1 %v7016_v32 }
  0x5e   :  { %6144 = vmatmul.mubr.f32.gmra.mxu0 %v7022_v35 }
  0x5f   :  { %6152 = vmatmul.mubr.f32.gmra.mxu1 %v7022_v35  ;;  %6156 = vmatprep.mubr.f32.mxu0 %v6964_v15 }
  0x60   :  { %6164 = vmatprep.mubr.f32.mxu1 %v6902_v55 }
  0x81   :  { %v509_v62 = vpop.permute.xlu0 %508 }
  0x82   :  { %vm510_vm3 = vcmp.eq.s32.totalorder %v509_v62, 1 }
  0xce   :  { %v128_v9 = vpop.f32.mrf.mxu0 }
  0xcf   :  { %v204_v27 = vpop.f32.mrf.mxu1 }
  0xd0   :  { %v5984_v36 = vpop.f32.mrf.mxu0  ;;  %v205_v50 = vadd.f32 %v204_v27, %v128_v9  ;;  %v2865_v27 = vld [vmem:[%s8042_s11] sm:$0xff] }
  0xd1   :  { %v5989_v46 = vpop.f32.mrf.mxu1  ;;  %v7153_v57 = vand.u32 4294901760, %v2865_v27 }
  0xd2   :  { %v278_v51 = vpop.f32.mrf.mxu0 }
  0xd3   :  { %v352_v52 = vpop.f32.mrf.mxu1  ;;  %v279_v53 = vadd.f32 %v278_v51, %v205_v50  ;;  %v7135_v50 = vsub.f32 %v2868_v39, %v7111_v44  ;;  %v7137_v51 = vand.u32 4294901760, %v2866_v47 }
  0xd4   :  { %v5994_v54 = vpop.f32.mrf.mxu0 }
  0xd5   :  { %v5999_v56 = vpop.f32.mrf.mxu1  ;;  %v353_v58 = vadd.f32 %v352_v52, %v279_v53  ;;  %v7142_v52 = vsub.f32 %v2867_v41, %v7113_v45 }
  0xd6   :  { %v426_v10 = vpop.f32.mrf.mxu0 }
  0xd7   :  { %v498_v12 = vpop.f32.mrf.mxu1  ;;  %v427_v16 = vadd.f32 %v426_v10, %v353_v58  ;;  %v7164_v10 = vsub.f32 %v2866_v47, %v7137_v51 }
  0xd8   :  { %v6004_v19 = vpop.f32.mrf.mxu0 }
  0xd9   :  { %v6009_v21 = vpop.f32.mrf.mxu1  ;;  %v499_v23 = vadd.f32 %v498_v12, %v427_v16  ;;  %v8046_v12 = vand.u32 4294901760, %v7135_v50  ;;  %v8045_v16 = vand.u32 4294901760, %v7142_v52 }
  0xda   :  { %v7070_v24 = vpop.f32.mrf.mxu0 }
  0xdb   :  { %v7072_v26 = vpop.f32.mrf.mxu1  ;;  %v511_v28 = vsel %vm510_vm3, %v499_v23, %v503_v17  ;;  %v7175_v23 = vsub.f32 %v2865_v27, %v7153_v57 }
  0xdc   :  { %v7074_v29 = vand.u32 4294901760, %v511_v28  ;;  %v7076_v30 = vpop.f32.mrf.mxu0  ;;  %v512_v33 = vmul.f32 %v511_v28, %v6785_v6 }
  0xdd   :  { %v7078_v31 = vpop.f32.mrf.mxu1  ;;  %8103 = vst [vmem:[#allocation22_spill] sm:$0xff] %v7175_v23 }
  0xde   :  { %v2424_v13 = vsub.f32 %v511_v28, %v7074_v29  ;;  %6154 = vmatprep.subr.mxu0 %v7074_v29  ;;  %v7082_v0 = vpop.f32.mrf.mxu0  ;;  %v2878_v42 = vsel %vm2876_vm4, %v512_v33, 0  ;;  %v3091_v33 = vsub.f32 %v7135_v50, %v8046_v12  ;;  %v708_v47 = vadd.f32 %v7078_v31, %v7076_v30 }
  0xdf   :  { %v7084_v32 = vpop.f32.mrf.mxu1  ;;  %6155 = vmatpush3.msra.mxu0 %v7074_v29  ;;  %v7122_v9 = vand.u32 4294901760, %v2878_v42 }
  0xe0   :  { %6157 = vmatmul.mubr.f32.vlgmr.msra.gmra.mxu0 %v6977_v18  ;;  %6170 = vmatprep.subr.mxu0 %v2424_v13  ;;  %v2425_v34 = vand.u32 4294901760, %v2424_v13  ;;  %v7089_v35 = vpop.f32.mrf.mxu0  ;;  %v3092_v12 = vand.u32 4294901760, %v3091_v33  ;;  %v8104_v33 = vand.u32 4294901760, %v7175_v23 }
  0xe1   :  { %v7091_v37 = vpop.f32.mrf.mxu1  ;;  %6171 = vmatpush3.msra.mxu0 %v2424_v13  ;;  %6159 = vmatprep.mubr.f32.mxu0 %v6983_v20  ;;  %8102 = vst [vmem:[#allocation21_spill] sm:$0xff] %v7122_v9  ;;  %v7149_v56 = vsub.f32 %v2878_v42, %v7122_v9 }
  0xe2   :  { %6186 = vmatprep.subr.mxu0 %v2425_v34  ;;  %v2426_v38 = vsub.f32 %v2424_v13, %v2425_v34  ;;  %v7097_v40 = vpop.f32.mrf.mxu0 }
  0xe3   :  { %v7099_v6 = vpop.f32.mrf.mxu1  ;;  %v8047_v21 = vand.u32 4294901760, %v7149_v56 }
  0xe4   :  { %6160 = vmatmul.mubr.f32.gmra.mxu0 %v6994_v25  ;;  %v2427_v3 = vand.u32 4294901760, %v2426_v38  ;;  %v7106_v22 = vpop.f32.mrf.mxu0  ;;  %v3098_v38 = vsub.f32 %v7142_v52, %v8045_v16 }
  0xe5   :  { %v7108_v43 = vpop.f32.mrf.mxu1  ;;  %6172 = vmatprep.mubr.f32.mxu0 %v6918_v60 }
  0xe6   :  { %6162 = vmatprep.subr.mxu1 %v2427_v3  ;;  %v7118_v48 = vpop.f32.mrf.mxu0 }
  0xe7   :  { %v7120_v49 = vpop.f32.mrf.mxu1  ;;  %6163 = vmatpush3.msra.mxu1 %v2427_v3  ;;  %v714_v3 = vadd.f32 %v7072_v26, %v7070_v24  ;;  %v3099_v24 = vand.u32 4294901760, %v3098_v38  ;;  %v726_v26 = vadd.f32 %v7084_v32, %v7082_v0  ;;  %v720_v0 = vadd.f32 %v7091_v37, %v7089_v35 }
  0xe8   :  { %6165 = vmatmul.mubr.f32.vlgmr.msra.gmra.mxu1 %v6914_v59  ;;  %6173 = vmatmul.mubr.f32.vlgmr.msra.gmra.mxu0 %v6926_v63  ;;  %v7129_v36 = vpop.f32.mrf.mxu0  ;;  %v800_v32 = vadd.f32 %v7106_v22, %v708_v47 }
  0xe9   :  { %v7131_v46 = vpop.f32.mrf.mxu1  ;;  %6178 = vmatprep.subr.mxu1 %v7074_v29  ;;  %6187 = vmatpush3.msra.mxu0 %v2425_v34  ;;  %v8048_v34 = vand.u32 4294901760, %v7164_v10 }
  0xea   :  { %6179 = vmatpush3.msra.mxu1 %v7074_v29  ;;  %6167 = vmatprep.mubr.f32.mxu1 %v6920_v61  ;;  %v7144_v53 = vpop.f32.mrf.mxu0 }
  0xeb   :  { %v7146_v54 = vpop.f32.mrf.mxu1  ;;  %6194 = vmatprep.subr.mxu1 %v7074_v29  ;;  %6175 = vmatprep.mubr.f32.mxu0 %v6935_v5 }
  0xec   :  { %6168 = vmatmul.mubr.f32.gmra.mxu1 %v6928_v1  ;;  %6176 = vmatmul.mubr.f32.gmra.mxu0 %v6946_v8  ;;  %v7157_v58 = vpop.f32.mrf.mxu0 }
  0xed   :  { %v7159_v62 = vpop.f32.mrf.mxu1  ;;  %6180 = vmatprep.mubr.f32.mxu1 %v6932_v4  ;;  %6188 = vmatprep.mubr.f32.mxu0 %v6902_v55  ;;  %v8105_v4 = vmov 0.0  }
  0xee   :  { %6202 = vmatprep.subr.mxu0 %v8051_v2  ;;  %v7169_v17 = vpop.f32.mrf.mxu0 }
  0xef   :  { %v7171_v19 = vpop.f32.mrf.mxu1 }
  0xf0   :  { %6181 = vmatmul.mubr.f32.vlgmr.msra.gmra.mxu1 %v6943_v7  ;;  %6189 = vmatmul.mubr.f32.vlgmr.msra.gmra.mxu0 %v6914_v59  ;;  %v7179_v28 = vpop.f32.mrf.mxu0 }
  0xf1   :  { %v7181_v13 = vpop.f32.mrf.mxu1  ;;  %6195 = vmatpush3.msra.mxu1 %v7074_v29  ;;  %6203 = vmatpush3.msra.mxu0 %v7111_v44  ;;  %v2976_v29 = vsub.f32 %v7149_v56, %v8047_v21  ;;  %v3105_v21 = vsub.f32 %v7164_v10, %v8048_v34  ;;  %v3112_v34 = vsub.f32 %v7175_v23, %v8104_v33 }
  0xf2   :  { %6204 = vmatprep.subr.mxu0 %v8051_v2  ;;  %6183 = vmatprep.mubr.f32.mxu1 %v6953_v11  ;;  %v6062_v39 = vpop.f32.mrf.mxu0 }
  0xf3   :  { %v6070_v41 = vpop.f32.mrf.mxu1  ;;  %6191 = vmatprep.mubr.f32.mxu0 %v6920_v61  ;;  %6205 = vmatpush3.msra.mxu0 %v7113_v45  ;;  %v2977_v42 = vand.u32 4294901760, %v2976_v29 }
  0xf4   :  { %6184 = vmatmul.mubr.f32.gmra.mxu1 %v6960_v14  ;;  %6192 = vmatmul.mubr.f32.gmra.mxu0 %v6928_v1  ;;  %v1188_v27 = vpop.f32.mrf.mxu0  ;;  %v807_v14 = vadd.f32 %v7097_v40, %v714_v3  ;;  %v1301_v11 = vadd.f32 %v6070_v41, %v6062_v39  ;;  %v821_v40 = vadd.f32 %v7118_v48, %v726_v26  ;;  %v3113_v3 = vand.u32 4294901760, %v3112_v34 }
  0xf5   :  { %v1294_v16 = vpop.f32.mrf.mxu1  ;;  %6206 = vmatprep.subr.mxu0 %v8051_v2  ;;  %6196 = vmatprep.mubr.f32.mxu1 %v6902_v55 }
  0xf6   :  { %6207 = vmatpush3.msra.mxu0 %v7137_v51  ;;  %6210 = vmatprep.mubr.msk.f32.mxu0 %vm6688_vm1, %v8051_v2  ;;  %v6065_v30 = vpop.f32.mrf.mxu0  ;;  %v1295_v7 = vadd.f32 %v1294_v16, %v1188_v27  ;;  %v903_v35 = vadd.f32 %v7099_v6, %v807_v14  ;;  %v814_v16 = vadd.f32 %v7129_v36, %v720_v0 }
  0xf7   :  { %v6073_v31 = vpop.f32.mrf.mxu1  ;;  %6208 = vmatprep.subr.mxu0 %v8051_v2  ;;  %6237 = vmatprep.subr.mxu1 %v8051_v2  ;;  %v3106_v2 = vand.u32 4294901760, %v3105_v21 }
  0xf8   :  { %6209 = vmatpush3.msra.mxu0 %v7153_v57  ;;  %6197 = vmatmul.mubr.f32.vlgmr.msra.gmra.mxu1 %v6914_v59  ;;  %v1208_v38 = vpop.f32.mrf.mxu0  ;;  %v1313_v37 = vadd.f32 %v6073_v31, %v6065_v30 }
  0xf9   :  { %v1306_v29 = vpop.f32.mrf.mxu1  ;;  %6211 = vmatmul.mubr.f32.vlgmr.msra.gmra.mxu0 %v2977_v42  ;;  %6238 = vmatpush3.msra.mxu1 %v3092_v12  ;;  %v895_v12 = vadd.f32 %v7108_v43, %v800_v32  ;;  %v999_v43 = vadd.f32 %v7144_v53, %v903_v35 }
  0xfa   :  { %6239 = vmatprep.subr.mxu1 %v8105_v4  ;;  %6199 = vmatprep.mubr.f32.mxu1 %v6920_v61  ;;  %v6078_v39 = vpop.f32.mrf.mxu0  ;;  %v1307_v14 = vadd.f32 %v1306_v29, %v1208_v38 }
  0xfb   :  { %v6086_v41 = vpop.f32.mrf.mxu1  ;;  %6240 = vmatpush3.msra.mxu1 %v3099_v24  ;;  %v1394_v22 = vadd.f32 %v6078_v39, %v1301_v11  ;;  %6213 = vmatprep.mubr.msk.f32.mxu0 %vm6688_vm1, %v8105_v4  ;;  %v919_v11 = vadd.f32 %v7120_v49, %v821_v40 }
  0xfc   :  { %6200 = vmatmul.mubr.f32.gmra.mxu1 %v6928_v1  ;;  %6241 = vmatprep.subr.mxu1 %v8105_v4  ;;  %v1386_v48 = vpop.f32.mrf.mxu0 }
  0xfd   :  { %v1481_v21 = vpop.f32.mrf.mxu1  ;;  %6242 = vmatpush3.msra.mxu1 %v3106_v2  ;;  %6245 = vmatprep.mubr.msk.f32.mxu1 %vm6688_vm1, %v8105_v4  ;;  %v1387_v6 = vadd.f32 %v1386_v48, %v1295_v7  ;;  %v1490_v36 = vadd.f32 %v6086_v41, %v1394_v22  ;;  %v911_v2 = vadd.f32 %v7131_v46, %v814_v16 }
  0xfe   :  { %6243 = vmatprep.subr.mxu1 %v8105_v4  ;;  %v6081_v34 = vpop.f32.mrf.mxu0  ;;  %6272 = vmatprep.subr.mxu0 %v8105_v4  ;;  %v993_v7 = vadd.f32 %v7157_v58, %v895_v12  ;;  %v1011_v53 = vadd.f32 %v7169_v17, %v919_v11  ;;  %v1089_v46 = vadd.f32 %v7146_v54, %v999_v43 }
  0xff   :  { %v6089_v42 = vpop.f32.mrf.mxu1  ;;  %6244 = vmatpush3.msra.mxu1 %v3113_v3  ;;  %v1408_v47 = vadd.f32 %v6081_v34, %v1313_v37  ;;  %6273 = vmatpush3.msra.mxu0 %v7135_v50  ;;  %v1482_v49 = vadd.f32 %v1481_v21, %v1387_v6  ;;  %v1005_v32 = vadd.f32 %v7179_v28, %v911_v2 }
 0x100   :  { %6246 = vmatmul.mubr.f32.vlgmr.msra.gmra.mxu1 %v7122_v9  ;;  %v1400_v27 = vpop.f32.mrf.mxu0  ;;  %6307 = vmatprep.subr.mxu1 %v8105_v4  ;;  %v1083_v0 = vadd.f32 %v7159_v62, %v993_v7  ;;  %v1101_v54 = vadd.f32 %v7171_v19, %v1011_v53 }
 0x101   :  { %v1497_v24 = vpop.f32.mrf.mxu1  ;;  %v1401_v26 = vadd.f32 %v1400_v27, %v1307_v14  ;;  %6248 = vmatprep.mubr.msk.f32.mxu1 %vm6688_vm1, %v8105_v4  ;;  %6308 = vmatpush3.msra.mxu1 %v7111_v44  ;;  %v1506_v58 = vadd.f32 %v6089_v42, %v1408_v47  ;;  %v1095_v37 = vadd.f32 %v7181_v13, %v1005_v32 }
 0x102   :  { %v6094_v30 = vpop.f32.mrf.mxu0  ;;  %6309 = vmatprep.subr.mxu1 %v8105_v4  ;;  %6274 = vmatprep.subr.mxu0 %v8105_v4 }
 0x103   :  { %v6102_v31 = vpop.f32.mrf.mxu1  ;;  %v1586_v33 = vadd.f32 %v6094_v30, %v1490_v36  ;;  %6310 = vmatpush3.msra.mxu1 %v7113_v45  ;;  %6275 = vmatpush3.msra.mxu0 %v7142_v52  ;;  %v1498_v29 = vadd.f32 %v1497_v24, %v1401_v26 }
 0x104   :  { %v1579_v38 = vpop.f32.mrf.mxu0  ;;  %6311 = vmatprep.subr.mxu1 %v8105_v4  ;;  %6276 = vmatprep.subr.mxu0 %v8105_v4 }
 0x105   :  { %v1669_v17 = vpop.f32.mrf.mxu1  ;;  %v1580_v40 = vadd.f32 %v1579_v38, %v1482_v49  ;;  %v1676_v39 = vadd.f32 %v6102_v31, %v1586_v33  ;;  %6312 = vmatpush3.msra.mxu1 %v7137_v51  ;;  %6277 = vmatpush3.msra.mxu0 %v7164_v10 }
 0x106   :  { %v6097_v41 = vpop.f32.mrf.mxu0  ;;  %6313 = vmatprep.subr.mxu1 %v8105_v4  ;;  %6278 = vmatprep.subr.mxu0 %v8105_v4 }
 0x107   :  { %v6105_v3 = vpop.f32.mrf.mxu1  ;;  %v1692_v62 = vmul.f32 %v1676_v39, %v1089_v46  ;;  %v1670_v28 = vadd.f32 %v1669_v17, %v1580_v40  ;;  %v1598_v35 = vadd.f32 %v6097_v41, %v1506_v58  ;;  %6314 = vmatpush3.msra.mxu1 %v7153_v57  ;;  %6279 = vmatpush3.msra.mxu0 %v7175_v23 }
 0x108   :  { %v1591_v22 = vpop.f32.mrf.mxu0  ;;  %6377 = vmatprep.subr.mxu1 %v8105_v4  ;;  %6342 = vmatprep.subr.mxu0 %v8105_v4 }
 0x109   :  { %v1681_v12 = vpop.f32.mrf.mxu1  ;;  %v2884_v19 = vsel %vm2876_vm4, %v1692_v62, 0  ;;  %v1691_v16 = vmul.f32 %v1670_v28, %v1083_v0  ;;  %v1592_v48 = vadd.f32 %v1591_v22, %v1498_v29  ;;  %v1688_v21 = vadd.f32 %v6105_v3, %v1598_v35 }
 0x10a   :  { %v7272_v14 = vand.u32 4294901760, %v2884_v19  ;;  %v6110_v40 = vpop.f32.mrf.mxu0 }
 0x10b   :  { %v2881_v6 = vsel %vm2876_vm4, %v1691_v16, 0  ;;  %v1694_v11 = vmul.f32 %v1688_v21, %v1101_v54  ;;  %v1682_v34 = vadd.f32 %v1681_v12, %v1592_v48  ;;  %v6118_v54 = vpop.f32.mrf.mxu1 }
 0x10c   :  { %8106 = vst [vmem:[#allocation23_spill] sm:$0xff] %v7272_v14  ;;  %v7276_v42 = vsub.f32 %v2884_v19, %v7272_v14  ;;  %v7278_v13 = vand.u32 4294901760, %v2881_v6  ;;  %v1783_v39 = vpop.f32.mrf.mxu0 }
 0x10d   :  { %v2890_v43 = vsel %vm2876_vm4, %v1694_v11, 0  ;;  %v1693_v36 = vmul.f32 %v1682_v34, %v1095_v37  ;;  %v1889_v3 = vpop.f32.mrf.mxu1 }
 0x10e   :  { %8107 = vst [vmem:[#allocation24_spill] sm:$0xff] %v7278_v13  ;;  %v7282_v47 = vsub.f32 %v2881_v6, %v7278_v13  ;;  %v7284_v2 = vand.u32 4294901760, %v2890_v43  ;;  %6249 = vmatmul.mubr.f32.gmra.mxu1 %v7278_v13  ;;  %v8057_v7 = vand.u32 4294901760, %v7276_v42  ;;  %v6113_v41 = vpop.f32.mrf.mxu0  ;;  %v1890_v8 = vadd.f32 %v1889_v3, %v1783_v39 }
 0x10f   :  { %v2887_v27 = vsel %vm2876_vm4, %v1693_v36, 0  ;;  %6251 = vmatprep.mubr.msk.f32.mxu1 %vm6688_vm1, %v8105_v4  ;;  %v6121_v28 = vpop.f32.mrf.mxu1 }
 0x110   :  { %8108 = vst [vmem:[#allocation25_spill] sm:$0xff] %v7284_v2  ;;  %v7291_v24 = vand.u32 4294901760, %v2887_v27  ;;  %v8058_v49 = vand.u32 4294901760, %v7282_v47  ;;  %v7295_v26 = vsub.f32 %v2890_v43, %v7284_v2  ;;  %v2996_v31 = vsub.f32 %v7276_v42, %v8057_v7  ;;  %v1803_v62 = vpop.f32.mrf.mxu0 }
 0x111   :  { %v1901_v37 = vpop.f32.mrf.mxu1  ;;  %v1908_v1 = vadd.f32 %v6121_v28, %v6113_v41 }
 0x112   :  { %8109 = vst [vmem:[#allocation26_spill] sm:$0xff] %v7291_v24  ;;  %v7298_v53 = vsub.f32 %v2887_v27, %v7291_v24  ;;  %v2986_v30 = vsub.f32 %v7282_v47, %v8058_v49  ;;  %6252 = vmatmul.mubr.f32.gmra.mxu1 %v7272_v14  ;;  %v2997_v33 = vand.u32 4294901760, %v2996_v31  ;;  %v8055_v32 = vand.u32 4294901760, %v7295_v26  ;;  %v6126_v35 = vpop.f32.mrf.mxu0 }
 0x113   :  { %6254 = vmatprep.mubr.msk.f32.mxu1 %vm6688_vm1, %v8105_v4  ;;  %v6134_v12 = vpop.f32.mrf.mxu1  ;;  %v1902_v60 = vadd.f32 %v1901_v37, %v1803_v62 }
 0x114   :  { %v2987_v46 = vand.u32 4294901760, %v2986_v30  ;;  %v8056_v58 = vand.u32 4294901760, %v7298_v53  ;;  %v3016_v17 = vsub.f32 %v7295_v26, %v8055_v32  ;;  %v1981_v22 = vpop.f32.mrf.mxu0 }
 0x115   :  { %v2076_v16 = vpop.f32.mrf.mxu1  ;;  %v1982_v18 = vadd.f32 %v1981_v22, %v1890_v8 }
 0x116   :  { %6214 = vmatmul.mubr.f32.gmra.mxu0 %v2987_v46  ;;  %v3006_v0 = vsub.f32 %v7298_v53, %v8056_v58  ;;  %6255 = vmatmul.mubr.f32.gmra.mxu1 %v7291_v24  ;;  %v3017_v29 = vand.u32 4294901760, %v3016_v17  ;;  %v6129_v19 = vpop.f32.mrf.mxu0  ;;  %v1896_v58 = vadd.f32 %v6118_v54, %v6110_v40 }
 0x117   :  { %6216 = vmatprep.mubr.msk.f32.mxu0 %vm6688_vm1, %v8105_v4  ;;  %6257 = vmatprep.mubr.msk.f32.mxu1 %vm6688_vm1, %v8105_v4  ;;  %v6137_v21 = vpop.f32.mrf.mxu1  ;;  %v2003_v55 = vadd.f32 %v6129_v19, %v1908_v1  ;;  %v2077_v39 = vadd.f32 %v2076_v16, %v1982_v18 }
 0x118   :  { %v3007_v38 = vand.u32 4294901760, %v3006_v0  ;;  %v1995_v48 = vpop.f32.mrf.mxu0  ;;  %v1989_v63 = vadd.f32 %v6126_v35, %v1896_v58 }
 0x119   :  { %v2092_v11 = vpop.f32.mrf.mxu1  ;;  %v1996_v40 = vadd.f32 %v1995_v48, %v1902_v60  ;;  %v2101_v58 = vadd.f32 %v6137_v21, %v2003_v55 }
 0x11a   :  { %6217 = vmatmul.mubr.f32.gmra.mxu0 %v2997_v33  ;;  %6258 = vmatmul.mubr.f32.gmra.mxu1 %v7284_v2  ;;  %v6142_v6 = vpop.f32.mrf.mxu0  ;;  %v2085_v14 = vadd.f32 %v6134_v12, %v1989_v63 }
 0x11b   :  { %6219 = vmatprep.mubr.msk.f32.mxu0 %vm6688_vm1, %v8105_v4  ;;  %6260 = vmatprep.mubr.msk.f32.mxu1 %vm6688_vm1, %v8105_v4  ;;  %v6150_v43 = vpop.f32.mrf.mxu1 }
 0x11c   :  { %v2174_v34 = vpop.f32.mrf.mxu0  ;;  %v2181_v37 = vadd.f32 %v6142_v6, %v2085_v14 }
 0x11d   :  { %v2264_v27 = vpop.f32.mrf.mxu1  ;;  %v2175_v19 = vadd.f32 %v2174_v34, %v2077_v39 }
 0x11e   :  { %6220 = vmatmul.mubr.f32.gmra.mxu0 %v3007_v38  ;;  %v6145_v36 = vpop.f32.mrf.mxu0  ;;  %v2271_v12 = vadd.f32 %v6150_v43, %v2181_v37 }
 0x11f   :  { %6222 = vmatprep.mubr.msk.f32.mxu0 %vm6688_vm1, %v8105_v4  ;;  %v6153_v46 = vpop.f32.mrf.mxu1  ;;  %v2193_v60 = vadd.f32 %v6145_v36, %v2101_v58 }
 0x120   :  { %v2186_v30 = vpop.f32.mrf.mxu0 }
 0x121   :  { %v7331_v38 = vpop.f32.mrf.mxu1  ;;  %v2283_v48 = vadd.f32 %v6153_v46, %v2193_v60 }
 0x122   :  { %6223 = vmatmul.mubr.f32.gmra.mxu0 %v3017_v29 }
 0x123   :  { %6225 = vmatprep.mubr.msk.f32.mxu0 %vm6688_vm1, %v8105_v4 }
 0x1a0   :  { %v6158_v31 = vpop.f32.mrf.mxu0 }
 0x1a2   :  { %v2358_v33 = vpop.f32.mrf.mxu0 }
 0x1a4   :  { %v6161_v0 = vpop.f32.mrf.mxu0 }
 0x1a6   :  { %v2378_v17 = vpop.f32.mrf.mxu0 }
 0x1a8   :  { %v6166_v29 = vpop.f32.mrf.mxu1  ;;  %v6174_v32 = vpop.f32.mrf.mxu0 }
 0x1a9   :  { %v2471_v59 = vadd.f32 %v6166_v29, %v6158_v31 }
 0x1aa   :  { %v2464_v7 = vpop.f32.mrf.mxu1  ;;  %v2556_v49 = vpop.f32.mrf.mxu0 }
 0x1ab   :  { %v2465_v15 = vadd.f32 %v2464_v7, %v2358_v33  ;;  %v2564_v13 = vadd.f32 %v6174_v32, %v2471_v59  ;;  %v2093_v7 = vadd.f32 %v2092_v11, %v1996_v40 }
 0x1ac   :  { %v6169_v5 = vpop.f32.mrf.mxu1  ;;  %v6177_v61 = vpop.f32.mrf.mxu0 }
 0x1ad   :  { %v2483_v9 = vadd.f32 %v6169_v5, %v6161_v0  ;;  %v2557_v41 = vadd.f32 %v2556_v49, %v2465_v15  ;;  %v2187_v55 = vadd.f32 %v2186_v30, %v2093_v7  ;;  %v2265_v49 = vadd.f32 %v2264_v27, %v2175_v19 }
 0x1ae   :  { %v2476_v25 = vpop.f32.mrf.mxu1  ;;  %v2570_v20 = vpop.f32.mrf.mxu0 }
 0x1af   :  { %v2477_v3 = vadd.f32 %v2476_v25, %v2378_v17  ;;  %v2578_v31 = vadd.f32 %v6177_v61, %v2483_v9  ;;  %v2277_v34 = vadd.f32 %v7331_v38, %v2187_v55  ;;  %v8111_v55 = vand.u32 4294901760, %v7282_v47 }
 0x1b0   :  { %v6182_v2 = vpop.f32.mrf.mxu1  ;;  %v6190_v24 = vpop.f32.mrf.mxu0 }
 0x1b1   :  { %v2660_v28 = vadd.f32 %v6182_v2, %v2564_v13  ;;  %v2571_v63 = vadd.f32 %v2570_v20, %v2477_v3  ;;  %v7336_v20 = vld [vmem:[%s8043_s12] ss:$0 sm:$0xff]  ;;  %s6690_s12 = smov 16  }
 0x1b2   :  { %v2651_v54 = vpop.f32.mrf.mxu1  ;;  %v2749_v23 = vpop.f32.mrf.mxu0 }
 0x1b3   :  { %v2652_v8 = vadd.f32 %v2651_v54, %v2557_v41  ;;  %v2756_v59 = vadd.f32 %v6190_v24, %v2660_v28 }
 0x1b4   :  { %v6185_v35 = vpop.f32.mrf.mxu1  ;;  %v6193_v62 = vpop.f32.mrf.mxu0 }
 0x1b5   :  { %v2676_v5 = vadd.f32 %v6185_v35, %v2578_v31  ;;  %v2750_v18 = vadd.f32 %v2749_v23, %v2652_v8 }
 0x1b6   :  { %v2667_v1 = vpop.f32.mrf.mxu1  ;;  %v2761_v22 = vpop.f32.mrf.mxu0 }
 0x1b7   :  { %v2668_v15 = vadd.f32 %v2667_v1, %v2571_v63  ;;  %v2768_v14 = vadd.f32 %v6193_v62, %v2676_v5 }
 0x1b8   :  { %v6198_v32 = vpop.f32.mrf.mxu1 }
 0x1b9   :  { %v2846_v25 = vadd.f32 %v6198_v32, %v2756_v59  ;;  %v2979_v13 = vpop.f32.mrf.mxu0  ;;  %v2762_v21 = vadd.f32 %v2761_v22, %v2668_v15 }
 0x1ba   :  { %v2839_v2 = vpop.f32.mrf.mxu1  ;;  %v2980_v27 = vadd.f32 %v7336_v20, %v2979_v13 }
 0x1bb   :  { %v2862_v61 = vmul.f32 %v2846_v25, %v2271_v12  ;;  %v2840_v9 = vadd.f32 %v2839_v2, %v2750_v18  ;;  %v6212_v16 = vpop.f32.mrf.mxu0  ;;  %v8110_v18 = vand.u32 4294901760, %v7149_v56 }
 0x1bc   :  { %v6201_v24 = vpop.f32.mrf.mxu1  ;;  %v8112_v16 = vand.u32 4294901760, %v7276_v42 }
 0x1bd   :  { %v2896_v23 = vsel %vm2876_vm4, %v2862_v61, 0  ;;  %v2861_v6 = vmul.f32 %v2840_v9, %v2265_v49  ;;  %v2858_v11 = vadd.f32 %v6201_v24, %v2768_v14 }
 0x1be   :  { %v7340_v43 = vand.u32 4294901760, %v2896_v23  ;;  %v2851_v36 = vpop.f32.mrf.mxu1 }
 0x1bf   :  { %v2893_v30 = vsel %vm2876_vm4, %v2861_v6, 0  ;;  %v2864_v46 = vmul.f32 %v2858_v11, %v2283_v48  ;;  %v2852_v33 = vadd.f32 %v2851_v36, %v2762_v21  ;;  %v8113_v21 = vand.u32 4294901760, %v7135_v50 }
 0x1c0   :  { %v7345_v0 = vsub.f32 %v2896_v23, %v7340_v43  ;;  %v7347_v17 = vand.u32 4294901760, %v2893_v30  ;;  %v3150_v29 = vpop.f32.mrf.mxu1  ;;  %v8114_v11 = vand.u32 4294901760, %v7298_v53 }
 0x1c1   :  { %v2902_v40 = vsel %vm2876_vm4, %v2864_v46, 0  ;;  %v2863_v54 = vmul.f32 %v2852_v33, %v2277_v34  ;;  %v7350_v39 = vadd.f32 %v3150_v29, %v2980_v27  ;;  %v8116_v27 = vand.u32 4294901760, %v7295_v26 }
 0x1c2   :  { %v7353_v38 = vsub.f32 %v2893_v30, %v7347_v17  ;;  %v6247_v41 = vpop.f32.mrf.mxu1  ;;  %6261 = vmatmul.mubr.f32.gmra.mxu1 %v7347_v17  ;;  %v7359_v28 = vand.u32 4294901760, %v2902_v40  ;;  %v3035_v62 = vand.u32 4294901760, %v7345_v0 }
 0x1c3   :  { %v2899_v3 = vsel %vm2876_vm4, %v2863_v54, 0  ;;  %6263 = vmatprep.mubr.msk.f32.mxu1 %vm6688_vm1, %v8105_v4  ;;  %v8125_v54 = vld [vmem:[#allocation5_spill] sm:$0xff] }
 0x1c4   :  { %v7361_v58 = vand.u32 4294901760, %v2899_v3  ;;  %v3025_v35 = vand.u32 4294901760, %v7353_v38  ;;  %v7375_v8 = vsub.f32 %v2902_v40, %v7359_v28  ;;  %v3036_v1 = vsub.f32 %v7345_v0, %v3035_v62  ;;  %v8124_v40 = vld [vmem:[#allocation25_spill] sm:$0xff] }
 0x1c6   :  { %v7366_v37 = vsub.f32 %v2899_v3, %v7361_v58  ;;  %6264 = vmatmul.mubr.f32.gmra.mxu1 %v7340_v43  ;;  %v3026_v31 = vsub.f32 %v7353_v38, %v3025_v35  ;;  %v3037_v19 = vand.u32 4294901760, %v3036_v1  ;;  %v3055_v59 = vand.u32 4294901760, %v7375_v8 }
 0x1c7   :  { %6266 = vmatprep.mubr.msk.f32.mxu1 %vm6688_vm1, %v8105_v4 }
 0x1c8   :  { %v3027_v7 = vand.u32 4294901760, %v3026_v31  ;;  %v3045_v22 = vand.u32 4294901760, %v7366_v37  ;;  %v3056_v32 = vsub.f32 %v7375_v8, %v3055_v59 }
 0x1ca   :  { %6226 = vmatmul.mubr.f32.gmra.mxu0 %v3027_v7  ;;  %6267 = vmatmul.mubr.f32.gmra.mxu1 %v7361_v58  ;;  %v3046_v63 = vsub.f32 %v7366_v37, %v3045_v22  ;;  %v3057_v25 = vand.u32 4294901760, %v3056_v32 }
 0x1cb   :  { %6228 = vmatprep.mubr.msk.f32.mxu0 %vm6688_vm1, %v8105_v4  ;;  %6269 = vmatprep.mubr.msk.f32.mxu1 %vm6688_vm1, %v8105_v4 }
 0x1cc   :  { %v3047_v60 = vand.u32 4294901760, %v3046_v63 }
 0x1ce   :  { %6229 = vmatmul.mubr.f32.gmra.mxu0 %v3037_v19  ;;  %6270 = vmatmul.mubr.f32.gmra.mxu1 %v7359_v28  ;;  %v3156_v5 = vpop.f32.mrf.mxu1 }
 0x1cf   :  { %6231 = vmatprep.mubr.msk.f32.mxu0 %vm6688_vm1, %v8105_v4  ;;  %6315 = vmatprep.mubr.msk.f32.mxu1 %vm6688_vm1, %v8105_v4 }
 0x1d0   :  { %v6250_v12 = vpop.f32.mrf.mxu1 }
 0x1d2   :  { %6232 = vmatmul.mubr.f32.gmra.mxu0 %v3047_v60  ;;  %6316 = vmatmul.mubr.f32.vlgmr.msra.gmra.mxu1 %v8110_v18  ;;  %v3162_v15 = vpop.f32.mrf.mxu1 }
 0x1d3   :  { %6234 = vmatprep.mubr.msk.f32.mxu0 %vm6688_vm1, %v8105_v4  ;;  %6318 = vmatprep.mubr.msk.f32.mxu1 %vm6688_vm1, %v8105_v4 }
 0x1d4   :  { %6378 = vmatpush3.msra.mxu1 %v7111_v44  ;;  %v6253_v13 = vpop.f32.mrf.mxu1 }
 0x1d5   :  { %6379 = vmatprep.subr.mxu1 %v8105_v4 }
 0x1d6   :  { %6235 = vmatmul.mubr.f32.gmra.mxu0 %v3057_v25  ;;  %6319 = vmatmul.mubr.f32.gmra.mxu1 %v8111_v55  ;;  %v2989_v2 = vpop.f32.mrf.mxu0  ;;  %v3168_v49 = vpop.f32.mrf.mxu1 }
 0x1d7   :  { %6280 = vmatprep.mubr.msk.f32.mxu0 %vm6688_vm1, %v8105_v4  ;;  %6321 = vmatprep.mubr.msk.f32.mxu1 %vm6688_vm1, %v8105_v4  ;;  %v2990_v14 = vadd.f32 %v7336_v20, %v2989_v2 }
 0x1d8   :  { %6380 = vmatpush3.msra.mxu1 %v7113_v45  ;;  %v6215_v44 = vpop.f32.mrf.mxu0  ;;  %v6256_v61 = vpop.f32.mrf.mxu1 }
 0x1d9   :  { %6381 = vmatprep.subr.mxu1 %v8105_v4  ;;  %v7415_v9 = vadd.f32 %v3156_v5, %v2990_v14 }
 0x1da   :  { %6281 = vmatmul.mubr.f32.vlgmr.msra.gmra.mxu0 %v7149_v56  ;;  %6322 = vmatmul.mubr.f32.gmra.mxu1 %v8112_v16  ;;  %v2999_v48 = vpop.f32.mrf.mxu0  ;;  %v3174_v24 = vpop.f32.mrf.mxu1 }
 0x1db   :  { %6283 = vmatprep.mubr.msk.f32.mxu0 %vm6688_vm1, %v8105_v4  ;;  %6324 = vmatprep.mubr.msk.f32.mxu1 %vm6688_vm1, %v8105_v4  ;;  %v3000_v45 = vadd.f32 %v7336_v20, %v2999_v48 }
 0x1dc   :  { %6382 = vmatpush3.msra.mxu1 %v7137_v51  ;;  %6343 = vmatpush3.msra.mxu0 %v8113_v21  ;;  %v6218_v23 = vpop.f32.mrf.mxu0  ;;  %v6259_v56 = vpop.f32.mrf.mxu1  ;;  %v8115_v51 = vand.u32 4294901760, %v7142_v52 }
 0x1dd   :  { %6383 = vmatprep.subr.mxu1 %v8105_v4  ;;  %6344 = vmatprep.subr.mxu0 %v8105_v4  ;;  %v7430_v6 = vadd.f32 %v3162_v15, %v3000_v45 }
 0x1de   :  { %6284 = vmatmul.mubr.f32.gmra.mxu0 %v7282_v47  ;;  %6325 = vmatmul.mubr.f32.gmra.mxu1 %v8114_v11  ;;  %v3009_v34 = vpop.f32.mrf.mxu0 }
 0x1df   :  { %6286 = vmatprep.mubr.msk.f32.mxu0 %vm6688_vm1, %v8105_v4  ;;  %6327 = vmatprep.mubr.msk.f32.mxu1 %vm6688_vm1, %v8105_v4  ;;  %v3010_v50 = vadd.f32 %v7336_v20, %v3009_v34 }
 0x1e0   :  { %6384 = vmatpush3.msra.mxu1 %v7153_v57  ;;  %6345 = vmatpush3.msra.mxu0 %v8115_v51  ;;  %v6221_v36 = vpop.f32.mrf.mxu0  ;;  %v8117_v57 = vand.u32 4294901760, %v7164_v10  ;;  %v8120_v10 = vld [vmem:[#allocation21_spill] sm:$0xff] }
 0x1e1   :  { %6346 = vmatprep.subr.mxu0 %v8105_v4  ;;  %v7444_v47 = vadd.f32 %v3168_v49, %v3010_v50 }
 0x1e2   :  { %6287 = vmatmul.mubr.f32.gmra.mxu0 %v7276_v42  ;;  %6328 = vmatmul.mubr.f32.gmra.mxu1 %v8116_v27  ;;  %v3019_v30 = vpop.f32.mrf.mxu0  ;;  %v8118_v42 = vld [vmem:[#allocation22_spill] sm:$0xff] }
 0x1e3   :  { %6289 = vmatprep.mubr.msk.f32.mxu0 %vm6688_vm1, %v8105_v4  ;;  %6330 = vmatprep.mubr.msk.f32.mxu1 %vm6688_vm1, %v8105_v4  ;;  %v3020_v52 = vadd.f32 %v7336_v20, %v3019_v30  ;;  %v8119_v29 = vand.u32 4294901760, %v8118_v42 }
 0x1e4   :  { %6347 = vmatpush3.msra.mxu0 %v8117_v57  ;;  %v6224_v46 = vpop.f32.mrf.mxu0 }
 0x1e5   :  { %6348 = vmatprep.subr.mxu0 %v8105_v4  ;;  %v7457_v33 = vadd.f32 %v3174_v24, %v3020_v52 }
 0x1e6   :  { %6290 = vmatmul.mubr.f32.gmra.mxu0 %v7298_v53  ;;  %6331 = vmatmul.mubr.f32.gmra.mxu1 %v3025_v35  ;;  %v8122_v53 = vld [vmem:[#allocation23_spill] sm:$0xff] }
 0x1e7   :  { %6292 = vmatprep.mubr.msk.f32.mxu0 %vm6688_vm1, %v8105_v4  ;;  %6333 = vmatprep.mubr.msk.f32.mxu1 %vm6688_vm1, %v8105_v4 }
 0x1e8   :  { %6349 = vmatpush3.msra.mxu0 %v8119_v29 }
 0x1ea   :  { %6293 = vmatmul.mubr.f32.gmra.mxu0 %v7295_v26  ;;  %6334 = vmatmul.mubr.f32.gmra.mxu1 %v3035_v62  ;;  %v8121_v26 = vld [vmem:[#allocation24_spill] sm:$0xff] }
 0x1eb   :  { %6295 = vmatprep.mubr.msk.f32.mxu0 %vm6688_vm1, %v8105_v4  ;;  %6336 = vmatprep.mubr.msk.f32.mxu1 %vm6688_vm1, %v8105_v4 }
 0x1ee   :  { %6296 = vmatmul.mubr.f32.gmra.mxu0 %v7353_v38  ;;  %6337 = vmatmul.mubr.f32.gmra.mxu1 %v3045_v22 }
 0x1ef   :  { %6298 = vmatprep.mubr.msk.f32.mxu0 %vm6688_vm1, %v8105_v4  ;;  %6339 = vmatprep.mubr.msk.f32.mxu1 %vm6688_vm1, %v8105_v4 }
 0x1f2   :  { %6299 = vmatmul.mubr.f32.gmra.mxu0 %v7345_v0  ;;  %6340 = vmatmul.mubr.f32.gmra.mxu1 %v3055_v59  ;;  %v8123_v0 = vld [vmem:[#allocation26_spill] sm:$0xff] }
 0x1f3   :  { %6301 = vmatprep.mubr.msk.f32.mxu0 %vm6688_vm1, %v8105_v4  ;;  %6385 = vmatprep.mubr.msk.f32.mxu1 %vm6688_vm1, %v8105_v4 }
 0x1f6   :  { %6302 = vmatmul.mubr.f32.gmra.mxu0 %v7366_v37  ;;  %6386 = vmatmul.mubr.f32.vlgmr.msra.gmra.mxu1 %v8120_v10 }
 0x1f7   :  { %6304 = vmatprep.mubr.msk.f32.mxu0 %vm6688_vm1, %v8105_v4  ;;  %6388 = vmatprep.mubr.msk.f32.mxu1 %vm6688_vm1, %v8105_v4 }
 0x1fa   :  { %6305 = vmatmul.mubr.f32.gmra.mxu0 %v7375_v8  ;;  %6389 = vmatmul.mubr.f32.gmra.mxu1 %v8121_v26 }
 0x1fb   :  { %6350 = vmatprep.mubr.msk.f32.mxu0 %vm6688_vm1, %v8105_v4  ;;  %6391 = vmatprep.mubr.msk.f32.mxu1 %vm6688_vm1, %v8105_v4 }
 0x1fe   :  { %6351 = vmatmul.mubr.f32.vlgmr.msra.gmra.mxu0 %v8120_v10  ;;  %6392 = vmatmul.mubr.f32.gmra.mxu1 %v8122_v53 }
 0x1ff   :  { %6353 = vmatprep.mubr.msk.f32.mxu0 %vm6688_vm1, %v8105_v4  ;;  %6394 = vmatprep.mubr.msk.f32.mxu1 %vm6688_vm1, %v8105_v4 }
 0x202   :  { %6354 = vmatmul.mubr.f32.gmra.mxu0 %v8121_v26  ;;  %6395 = vmatmul.mubr.f32.gmra.mxu1 %v8123_v0 }
 0x203   :  { %6356 = vmatprep.mubr.msk.f32.mxu0 %vm6688_vm1, %v8105_v4  ;;  %6397 = vmatprep.mubr.msk.f32.mxu1 %vm6688_vm1, %v8105_v4 }
 0x206   :  { %6357 = vmatmul.mubr.f32.gmra.mxu0 %v8122_v53  ;;  %6398 = vmatmul.mubr.f32.gmra.mxu1 %v8124_v40 }
 0x207   :  { %6359 = vmatprep.mubr.msk.f32.mxu0 %vm6688_vm1, %v8105_v4  ;;  %6400 = vmatprep.mubr.msk.f32.mxu1 %vm6688_vm1, %v8105_v4 }
 0x20a   :  { %6360 = vmatmul.mubr.f32.gmra.mxu0 %v8123_v0  ;;  %6401 = vmatmul.mubr.f32.gmra.mxu1 %v7347_v17 }
 0x20b   :  { %6362 = vmatprep.mubr.msk.f32.mxu0 %vm6688_vm1, %v8105_v4  ;;  %6403 = vmatprep.mubr.msk.f32.mxu1 %vm6688_vm1, %v8105_v4 }
 0x20e   :  { %6363 = vmatmul.mubr.f32.gmra.mxu0 %v8124_v40  ;;  %6404 = vmatmul.mubr.f32.gmra.mxu1 %v7340_v43 }
 0x20f   :  { %6365 = vmatprep.mubr.msk.f32.mxu0 %vm6688_vm1, %v8105_v4  ;;  %6406 = vmatprep.mubr.msk.f32.mxu1 %vm6688_vm1, %v8105_v4 }
 0x212   :  { %6366 = vmatmul.mubr.f32.gmra.mxu0 %v7347_v17  ;;  %6407 = vmatmul.mubr.f32.gmra.mxu1 %v7361_v58  ;;  %v8126_v17 = vld [vmem:[#allocation17_spill] sm:$0xff] }
 0x213   :  { %6368 = vmatprep.mubr.msk.f32.mxu0 %vm6688_vm1, %v8105_v4  ;;  %6409 = vmatprep.mubr.msk.f32.mxu1 %vm6688_vm1, %v8105_v4 }
 0x216   :  { %6369 = vmatmul.mubr.f32.gmra.mxu0 %v7340_v43  ;;  %6410 = vmatmul.mubr.f32.gmra.mxu1 %v7359_v28 }
 0x217   :  { %6371 = vmatprep.mubr.msk.f32.mxu0 %vm6688_vm1, %v8105_v4  ;;  %6422 = vmatprep.mubr.f32.mxu1 %v8125_v54 }
 0x21a   :  { %6372 = vmatmul.mubr.f32.gmra.mxu0 %v7361_v58 }
 0x21b   :  { %6374 = vmatprep.mubr.msk.f32.mxu0 %vm6688_vm1, %v8105_v4 }
 0x21e   :  { %6375 = vmatmul.mubr.f32.gmra.mxu0 %v7359_v28 }
 0x21f   :  { %6414 = vmatprep.mubr.f32.mxu0 %v8126_v17 }
 0x282   :  { %v3180_v38 = vpop.f32.mrf.mxu1 }
 0x284   :  { %v6262_v41 = vpop.f32.mrf.mxu1 }
 0x286   :  { %v3186_v3 = vpop.f32.mrf.mxu1 }
 0x288   :  { %v6265_v43 = vpop.f32.mrf.mxu1 }
 0x28a   :  { %v3029_v35 = vpop.f32.mrf.mxu0  ;;  %v3192_v62 = vpop.f32.mrf.mxu1 }
 0x28b   :  { %v3030_v37 = vadd.f32 %v7336_v20, %v3029_v35 }
 0x28c   :  { %v6227_v31 = vpop.f32.mrf.mxu0  ;;  %v6268_v8 = vpop.f32.mrf.mxu1 }
 0x28d   :  { %v7548_v7 = vadd.f32 %v3180_v38, %v3030_v37 }
 0x28e   :  { %v3039_v58 = vpop.f32.mrf.mxu0  ;;  %v3198_v1 = vpop.f32.mrf.mxu1 }
 0x28f   :  { %v3040_v22 = vadd.f32 %v7336_v20, %v3039_v58 }
 0x290   :  { %v6230_v19 = vpop.f32.mrf.mxu0  ;;  %v6271_v28 = vpop.f32.mrf.mxu1 }
 0x291   :  { %v7551_v63 = vadd.f32 %v3186_v3, %v3040_v22 }
 0x292   :  { %v3049_v59 = vpop.f32.mrf.mxu0  ;;  %v3411_v5 = vpop.f32.mrf.mxu1 }
 0x293   :  { %v3050_v60 = vadd.f32 %v7336_v20, %v3049_v59 }
 0x294   :  { %v6233_v32 = vpop.f32.mrf.mxu0  ;;  %v6317_v12 = vpop.f32.mrf.mxu1 }
 0x295   :  { %v7554_v18 = vadd.f32 %v3192_v62, %v3050_v60 }
 0x296   :  { %v3059_v15 = vpop.f32.mrf.mxu0  ;;  %v3419_v25 = vpop.f32.mrf.mxu1 }
 0x297   :  { %v3060_v13 = vadd.f32 %v7336_v20, %v3059_v15 }
 0x298   :  { %v6236_v55 = vpop.f32.mrf.mxu0  ;;  %v6320_v2 = vpop.f32.mrf.mxu1 }
 0x299   :  { %v7557_v49 = vadd.f32 %v3198_v1, %v3060_v13 }
 0x29a   :  { %v3278_v14 = vpop.f32.mrf.mxu0  ;;  %v3427_v44 = vpop.f32.mrf.mxu1 }
 0x29b   :  { %v3279_v35 = vadd.f32 %v3278_v14, %v7350_v39 }
 0x29c   :  { %v6282_v61 = vpop.f32.mrf.mxu0  ;;  %v6323_v16 = vpop.f32.mrf.mxu1 }
 0x29d   :  { %v3412_v58 = vadd.f32 %v3411_v5, %v3279_v35 }
 0x29e   :  { %v3285_v48 = vpop.f32.mrf.mxu0  ;;  %v3435_v24 = vpop.f32.mrf.mxu1 }
 0x29f   :  { %v3286_v45 = vadd.f32 %v3285_v48, %v7415_v9 }
 0x2a0   :  { %v6285_v21 = vpop.f32.mrf.mxu0  ;;  %v6326_v23 = vpop.f32.mrf.mxu1 }
 0x2a1   :  { %v3420_v56 = vadd.f32 %v3419_v25, %v3286_v45 }
 0x2a2   :  { %v3292_v11 = vpop.f32.mrf.mxu0  ;;  %v7560_v34 = vpop.f32.mrf.mxu1 }
 0x2a3   :  { %v3293_v60 = vadd.f32 %v3292_v11, %v7430_v6 }
 0x2a4   :  { %v6288_v50 = vpop.f32.mrf.mxu0  ;;  %v6329_v20 = vpop.f32.mrf.mxu1 }
 0x2a5   :  { %v3428_v2 = vadd.f32 %v3427_v44, %v3293_v60 }
 0x2a6   :  { %v3299_v51 = vpop.f32.mrf.mxu0  ;;  %v7562_v36 = vpop.f32.mrf.mxu1 }
 0x2a7   :  { %v3300_v5 = vadd.f32 %v3299_v51, %v7444_v47 }
 0x2a8   :  { %v6291_v27 = vpop.f32.mrf.mxu0  ;;  %v6332_v30 = vpop.f32.mrf.mxu1 }
 0x2a9   :  { %v3436_v23 = vadd.f32 %v3435_v24, %v3300_v5 }
 0x2aa   :  { %v3306_v52 = vpop.f32.mrf.mxu0  ;;  %v7564_v57 = vpop.f32.mrf.mxu1 }
 0x2ab   :  { %v3307_v45 = vadd.f32 %v3306_v52, %v7457_v33 }
 0x2ac   :  { %v6294_v46 = vpop.f32.mrf.mxu0  ;;  %v6335_v42 = vpop.f32.mrf.mxu1 }
 0x2ad   :  { %v3444_v30 = vadd.f32 %v7560_v34, %v3307_v45 }
 0x2ae   :  { %v7566_v29 = vpop.f32.mrf.mxu0  ;;  %v7568_v9 = vpop.f32.mrf.mxu1 }
 0x2b0   :  { %v6297_v10 = vpop.f32.mrf.mxu0  ;;  %v6338_v26 = vpop.f32.mrf.mxu1 }
 0x2b2   :  { %v3320_v53 = vpop.f32.mrf.mxu0  ;;  %v7570_v0 = vpop.f32.mrf.mxu1 }
 0x2b3   :  { %v3321_v26 = vadd.f32 %v3320_v53, %v7551_v63 }
 0x2b4   :  { %v6300_v40 = vpop.f32.mrf.mxu0  ;;  %v6341_v17 = vpop.f32.mrf.mxu1 }
 0x2b6   :  { %v7572_v38 = vpop.f32.mrf.mxu0  ;;  %v3681_v41 = vpop.f32.mrf.mxu1 }
 0x2b8   :  { %v6303_v3 = vpop.f32.mrf.mxu0  ;;  %v6387_v43 = vpop.f32.mrf.mxu1 }
 0x2ba   :  { %v7575_v62 = vpop.f32.mrf.mxu0  ;;  %v3687_v37 = vpop.f32.mrf.mxu1 }
 0x2bc   :  { %v6306_v31 = vpop.f32.mrf.mxu0  ;;  %v6390_v8 = vpop.f32.mrf.mxu1 }
 0x2bd   :  { %v3460_v31 = vadd.f32 %v7564_v57, %v3321_v26  ;;  %v3328_v57 = vadd.f32 %v7572_v38, %v7554_v18 }
 0x2be   :  { %v3558_v1 = vpop.f32.mrf.mxu0  ;;  %v3693_v22 = vpop.f32.mrf.mxu1 }
 0x2bf   :  { %v3559_v19 = vadd.f32 %v3558_v1, %v3412_v58 }
 0x2c0   :  { %v6352_v28 = vpop.f32.mrf.mxu0  ;;  %v6393_v59 = vpop.f32.mrf.mxu1 }
 0x2c1   :  { %v7578_v32 = vadd.f32 %v3681_v41, %v3559_v19  ;;  %v3314_v28 = vadd.f32 %v7566_v29, %v7548_v7 }
 0x2c2   :  { %v3564_v12 = vpop.f32.mrf.mxu0  ;;  %v3699_v15 = vpop.f32.mrf.mxu1 }
 0x2c3   :  { %v3565_v25 = vadd.f32 %v3564_v12, %v3420_v56  ;;  %3735 = vrot.lane.b32.xlu0 %v7578_v32, %s6690_s12  ;;  %v3452_v12 = vadd.f32 %v7562_v36, %v3314_v28 }
 0x2c4   :  { %v6355_v39 = vpop.f32.mrf.mxu0  ;;  %v6396_v13 = vpop.f32.mrf.mxu1 }
 0x2c5   :  { %v7583_v55 = vadd.f32 %v3687_v37, %v3565_v25  ;;  %v3335_v39 = vadd.f32 %v7575_v62, %v7557_v49  ;;  %v3468_v13 = vadd.f32 %v7568_v9, %v3328_v57  ;;  %v7632_v49 = vld [vmem:[%s8041_s10] sm:$0xff]  ;;  %s6691_s10 = smov 112  }
 0x2c6   :  { %v3570_v14 = vpop.f32.mrf.mxu0  ;;  %v3705_v61 = vpop.f32.mrf.mxu1 }
 0x2c7   :  { %v3571_v16 = vadd.f32 %v3570_v14, %v3428_v2  ;;  %v3476_v29 = vadd.f32 %v7570_v0, %v3335_v39  ;;  %v8127_v14 = vld [vmem:[#allocation18_spill] sm:$0xff] }
 0x2c8   :  { %v6358_v6 = vpop.f32.mrf.mxu0  ;;  %v6399_v48 = vpop.f32.mrf.mxu1 }
 0x2c9   :  { %v7586_v21 = vadd.f32 %v3693_v22, %v3571_v16  ;;  %v8128_v16 = vld [vmem:[#allocation19_spill] sm:$0xff]  ;;  %v8129_v48 = vld [vmem:[#allocation20_spill] sm:$0xff] }
 0x2ca   :  { %v3576_v56 = vpop.f32.mrf.mxu0  ;;  %v3711_v11 = vpop.f32.mrf.mxu1 }
 0x2cb   :  { %v3577_v50 = vadd.f32 %v3576_v56, %v3436_v23  ;;  %v4406_v20 = vmul.f32 %v7586_v21, %v7586_v21  ;;  %v8130_v23 = vld [vmem:[#allocation7_spill] sm:$0xff]  ;;  %v8131_v56 = vld [vmem:[#allocation6_spill] sm:$0xff] }
 0x2cc   :  { %v6361_v47 = vpop.f32.mrf.mxu0  ;;  %v6402_v51 = vpop.f32.mrf.mxu1 }
 0x2cd   :  { %v7590_v44 = vadd.f32 %v3699_v15, %v3577_v50  ;;  %v4412_v27 = vsel %vm3738_vm5, %v4406_v20, 0.0  ;;  %v8133_v50 = vld [vmem:[#allocation8_spill] sm:$0xff]  ;;  %v8135_v47 = vld [vmem:[#allocation10_spill] sm:$0xff] }
 0x2ce   :  { %v3717_v46 = vpop.f32.mrf.mxu1  ;;  %4413 = vadd.xlane.f32.xlu1 %v4412_v27  ;;  %v3582_v33 = vpop.f32.mrf.mxu0  ;;  %v8134_v20 = vld [vmem:[#allocation12_spill] sm:$0xff]  ;;  %v8136_v51 = vld [vmem:[#allocation14_spill] sm:$0xff]  ;;  %v8137_v27 = vld [vmem:[#allocation11_spill] sm:$0xff] }
 0x2cf   :  { %v3583_v52 = vadd.f32 %v3582_v33, %v3444_v30  ;;  %v4407_v24 = vmul.f32 %v7590_v44, %v7590_v44  ;;  %v8138_v30 = vld [vmem:[#allocation13_spill] sm:$0xff]  ;;  %v8140_v33 = vld [vmem:[#allocation16_spill] sm:$0xff] }
 0x2d0   :  { %v6364_v42 = vpop.f32.mrf.mxu0  ;;  %v6405_v10 = vpop.f32.mrf.mxu1 }
 0x2d1   :  { %v7597_v40 = vadd.f32 %v3705_v61, %v3583_v52  ;;  %v4415_v17 = vsel %vm3738_vm5, %v4407_v24, 0.0 }
 0x2d2   :  { %v3723_v41 = vpop.f32.mrf.mxu1  ;;  %4416 = vadd.xlane.f32.xlu1 %v4415_v17  ;;  %v3588_v3 = vpop.f32.mrf.mxu0 }
 0x2d3   :  { %v4408_v34 = vmul.f32 %v7597_v40, %v7597_v40  ;;  %v3589_v25 = vadd.f32 %v3588_v3, %v3452_v12 }
 0x2d4   :  { %v6367_v43 = vpop.f32.mrf.mxu0  ;;  %v6408_v35 = vpop.f32.mrf.mxu1 }
 0x2d5   :  { %v4418_v37 = vsel %vm3738_vm5, %v4408_v34, 0.0  ;;  %v7616_v5 = vadd.f32 %v3711_v11, %v3589_v25  ;;  %v8132_v11 = vld [vmem:[#allocation9_spill] sm:$0xff] }
 0x2d6   :  { %v3729_v8 = vpop.f32.mrf.mxu1  ;;  %4419 = vadd.xlane.f32.xlu1 %v4418_v37  ;;  %v3594_v58 = vpop.f32.mrf.mxu0 }
 0x2d7   :  { %v3595_v63 = vadd.f32 %v3594_v58, %v3460_v31 }
 0x2d8   :  { %v6370_v53 = vpop.f32.mrf.mxu0  ;;  %v6411_v1 = vpop.f32.mrf.mxu1 }
 0x2d9   :  { %v7604_v22 = vadd.f32 %v3717_v46, %v3595_v63  ;;  %v8139_v46 = vld [vmem:[#allocation15_spill] sm:$0xff] }
 0x2da   :  { %v3600_v19 = vpop.f32.mrf.mxu0 }
 0x2db   :  { %4471 = vrot.lane.b32.xlu0 %v7604_v22, %s6690_s12  ;;  %v3601_v7 = vadd.f32 %v3600_v19, %v3468_v13 }
 0x2dc   :  { %v6373_v59 = vpop.f32.mrf.mxu0 }
 0x2dd   :  { %v7621_v2 = vadd.f32 %v3723_v41, %v3601_v7 }
 0x2de   :  { %v3606_v60 = vpop.f32.mrf.mxu0 }
 0x2df   :  { %v3607_v18 = vadd.f32 %v3606_v60, %v3476_v29 }
 0x2e0   :  { %v6376_v15 = vpop.f32.mrf.mxu0 }
 0x2e1   :  { %v7625_v36 = vadd.f32 %v3729_v8, %v3607_v18 }
 0x2e7   :  { %4469 = vrot.lane.b32.xlu1 %v7616_v5, %s6690_s12 }
 0x2eb   :  { %4473 = vrot.lane.b32.xlu1 %v7621_v2, %s6690_s12 }
 0x2ef   :  { %4475 = vrot.lane.b32.xlu1 %v7625_v36, %s6690_s12 }
 0x335   :  { %v3736_v9 = vpop.permute.xlu0 %3735 }
 0x336   :  { %v3739_v0 = vsel %vm3738_vm5, %v7632_v49, %v3736_v9 }
 0x337   :  { %v3771_v38 = vand.u32 4294901760, %v3739_v0 }
 0x339   :  { %v3878_v62 = vsub.f32 %v3739_v0, %v3771_v38  ;;  %6412 = vmatprep.subr.mxu0 %v3771_v38 }
 0x33a   :  { %6413 = vmatpush3.msra.mxu0 %v3771_v38 }
 0x33b   :  { %6415 = vmatmul.mubr.f32.vlgmr.msra.gmra.mxu0 %v8127_v14  ;;  %6428 = vmatprep.subr.mxu0 %v3878_v62  ;;  %v3879_v61 = vand.u32 4294901760, %v3878_v62 }
 0x33c   :  { %6429 = vmatpush3.msra.mxu0 %v3878_v62  ;;  %6417 = vmatprep.mubr.f32.mxu0 %v8128_v16 }
 0x33d   :  { %6444 = vmatprep.subr.mxu0 %v3879_v61  ;;  %v3880_v6 = vsub.f32 %v3878_v62, %v3879_v61 }
 0x33f   :  { %6418 = vmatmul.mubr.f32.gmra.mxu0 %v8129_v48  ;;  %v3881_v45 = vand.u32 4294901760, %v3880_v6  ;;  %v4405_v48 = vmul.f32 %v7583_v55, %v7583_v55 }
 0x340   :  { %6430 = vmatprep.mubr.f32.mxu0 %v8130_v23 }
 0x341   :  { %6420 = vmatprep.subr.mxu1 %v3881_v45 }
 0x342   :  { %6421 = vmatpush3.msra.mxu1 %v3881_v45 }
 0x343   :  { %6423 = vmatmul.mubr.f32.vlgmr.msra.gmra.mxu1 %v8131_v56  ;;  %6431 = vmatmul.mubr.f32.vlgmr.msra.gmra.mxu0 %v8132_v11  ;;  %v4409_v11 = vsel %vm3738_vm5, %v4405_v48, 0.0 }
 0x344   :  { %6436 = vmatprep.subr.mxu1 %v3771_v38  ;;  %6445 = vmatpush3.msra.mxu0 %v3879_v61 }
 0x345   :  { %6437 = vmatpush3.msra.mxu1 %v3771_v38  ;;  %6425 = vmatprep.mubr.f32.mxu1 %v8133_v50 }
 0x346   :  { %6452 = vmatprep.subr.mxu1 %v3771_v38  ;;  %6433 = vmatprep.mubr.f32.mxu0 %v8134_v20 }
 0x347   :  { %6426 = vmatmul.mubr.f32.gmra.mxu1 %v8135_v47  ;;  %6434 = vmatmul.mubr.f32.gmra.mxu0 %v8136_v51 }
 0x348   :  { %6438 = vmatprep.mubr.f32.mxu1 %v8137_v27  ;;  %6446 = vmatprep.mubr.f32.mxu0 %v8125_v54 }
 0x349   :  { %6460 = vmatprep.subr.mxu0 %v8105_v4 }
 0x34b   :  { %6439 = vmatmul.mubr.f32.vlgmr.msra.gmra.mxu1 %v8138_v30  ;;  %6447 = vmatmul.mubr.f32.vlgmr.msra.gmra.mxu0 %v8131_v56 }
 0x34c   :  { %6453 = vmatpush3.msra.mxu1 %v3771_v38  ;;  %6441 = vmatprep.mubr.f32.mxu1 %v8139_v46 }
 0x34d   :  { %6449 = vmatprep.mubr.f32.mxu0 %v8133_v50  ;;  %6471 = vmatprep.subr.mxu1 %v8105_v4 }
 0x34f   :  { %6442 = vmatmul.mubr.f32.gmra.mxu1 %v8140_v33  ;;  %6450 = vmatmul.mubr.f32.gmra.mxu0 %v8135_v47 }
 0x350   :  { %6454 = vmatprep.mubr.f32.mxu1 %v8125_v54  ;;  %6468 = vmatprep.mubr.msk.f32.mxu0 %vm6688_vm1, %v8105_v4 }
 0x353   :  { %6455 = vmatmul.mubr.f32.vlgmr.msra.gmra.mxu1 %v8131_v56 }
 0x354   :  { %6457 = vmatprep.mubr.f32.mxu1 %v8133_v50 }
 0x357   :  { %6458 = vmatmul.mubr.f32.gmra.mxu1 %v8135_v47  ;;  %v7664_v41 = vpop.xlane.xlu1 %4413 }
 0x358   :  { %6479 = vmatprep.mubr.msk.f32.mxu1 %vm6688_vm1, %v8105_v4  ;;  %6601 = vrsqrt.f32 %v7664_v41  ;;  %vm4430_vm6 = vcmp.eq.f32.partialorder %v7664_v41, inf  ;;  %vm4432_vm8 = vcmp.eq.f32.partialorder %v7664_v41, 0.0 }
 0x35b   :  { %v7666_v8 = vpop.xlane.xlu1 %4416 }
 0x35c   :  { %vm4437_vm14 = vcmp.eq.f32.partialorder %v7666_v8, inf  ;;  %vm4439_vm0 = vcmp.eq.f32.partialorder %v7666_v8, 0.0 }
 0x35f   :  { %v7668_v57 = vpop.xlane.xlu1 %4419 }
 0x363   :  { %v4470_v38 = vpop.permute.xlu1 %4469 }
 0x367   :  { %v4474_v46 = vpop.permute.xlu1 %4473 }
 0x3fb   :  { %v6416_v52 = vpop.f32.mrf.mxu0 }
 0x3fd   :  { %v3812_v24 = vpop.f32.mrf.mxu0 }
 0x3ff   :  { %v6419_v42 = vpop.f32.mrf.mxu0 }
 0x401   :  { %v3832_v10 = vpop.f32.mrf.mxu0 }
 0x403   :  { %v6424_v26 = vpop.f32.mrf.mxu1  ;;  %v6432_v17 = vpop.f32.mrf.mxu0 }
 0x404   :  { %v3925_v35 = vadd.f32 %v6424_v26, %v6416_v52 }
 0x405   :  { %v3918_v54 = vpop.f32.mrf.mxu1  ;;  %v4010_v3 = vpop.f32.mrf.mxu0 }
 0x406   :  { %v3919_v58 = vadd.f32 %v3918_v54, %v3812_v24  ;;  %v4018_v53 = vadd.f32 %v6432_v17, %v3925_v35  ;;  %v4472_v35 = vpop.permute.xlu0 %4471 }
 0x407   :  { %v6427_v34 = vpop.f32.mrf.mxu1  ;;  %v6435_v43 = vpop.f32.mrf.mxu0 }
 0x408   :  { %v4011_v28 = vadd.f32 %v4010_v3, %v3919_v58  ;;  %v3937_v16 = vadd.f32 %v6427_v34, %v6419_v42 }
 0x409   :  { %v3930_v37 = vpop.f32.mrf.mxu1  ;;  %v4024_v31 = vpop.f32.mrf.mxu0 }
 0x40a   :  { %v4032_v45 = vadd.f32 %v6435_v43, %v3937_v16  ;;  %v3931_v23 = vadd.f32 %v3930_v37, %v3832_v10  ;;  %v4476_v10 = vpop.permute.xlu1 %4475  ;;  %v4569_v16 = vmul.f32 %v7616_v5, %v7616_v5 }
 0x40b   :  { %v6440_v63 = vpop.f32.mrf.mxu1  ;;  %v6448_v19 = vpop.f32.mrf.mxu0 }
 0x40c   :  { %v4114_v59 = vadd.f32 %v6440_v63, %v4018_v53  ;;  %v4025_v47 = vadd.f32 %v4024_v31, %v3931_v23  ;;  %v4571_v31 = vmul.f32 %v7621_v2, %v7621_v2  ;;  %v4570_v63 = vmul.f32 %v7604_v22, %v7604_v22 }
 0x40d   :  { %v4105_v1 = vpop.f32.mrf.mxu1  ;;  %v4203_v25 = vpop.f32.mrf.mxu0 }
 0x40e   :  { %v4106_v12 = vadd.f32 %v4105_v1, %v4011_v28  ;;  %v4210_v39 = vadd.f32 %v6448_v19, %v4114_v59  ;;  %v4579_v58 = vsel %vm3738_vm5, %v4571_v31, 0.0  ;;  %v4576_v53 = vsel %vm3738_vm5, %v4570_v63, 0.0 }
 0x40f   :  { %v6443_v60 = vpop.f32.mrf.mxu1  ;;  %v6451_v50 = vpop.f32.mrf.mxu0  ;;  %v4572_v19 = vmul.f32 %v7625_v36, %v7625_v36 }
 0x410   :  { %v4204_v7 = vadd.f32 %v4203_v25, %v4106_v12  ;;  %v4130_v56 = vadd.f32 %v6443_v60, %v4032_v45 }
 0x411   :  { %v4121_v15 = vpop.f32.mrf.mxu1  ;;  %v4215_v33 = vpop.f32.mrf.mxu0  ;;  %v4582_v60 = vsel %vm3738_vm5, %v4572_v19, 0.0 }
 0x412   :  { %v4222_v51 = vadd.f32 %v6451_v50, %v4130_v56  ;;  %v4122_v27 = vadd.f32 %v4121_v15, %v4025_v47 }
 0x413   :  { %v6456_v13 = vpop.f32.mrf.mxu1 }
 0x414   :  { %v7670_v29 = vadd.f32 %v6456_v13, %v4210_v39  ;;  %v4216_v24 = vadd.f32 %v4215_v33, %v4122_v27 }
 0x415   :  { %v4293_v18 = vpop.f32.mrf.mxu1 }
 0x416   :  { %v7672_v9 = vadd.f32 %v4293_v18, %v4204_v7  ;;  %v4362_v0 = vmul.f32 %v7670_v29, %v7670_v29  ;;  %v4482_v37 = vmul.f32 %v4472_v35, %v7670_v29  ;;  %v4346_v15 = vmul.f32 %v7670_v29, %v7586_v21  ;;  %v6602_v7 = vpop.eup %6601 }
 0x417   :  { %v6459_v20 = vpop.f32.mrf.mxu1  ;;  %v4429_v21 = vmul.f32 %v6602_v7, %v7664_v41 }
 0x418   :  { %4519 = vrot.lane.b32.xlu0 %v4362_v0, %s6691_s10  ;;  %v4361_v62 = vmul.f32 %v7672_v9, %v7672_v9  ;;  %v4481_v14 = vmul.f32 %v4470_v38, %v7672_v9  ;;  %v4368_v61 = vsel %vm3738_vm5, %v4362_v0, 0.0  ;;  %v4312_v30 = vadd.f32 %v6459_v20, %v4222_v51 }
 0x419   :  { %v4305_v52 = vpop.f32.mrf.mxu1  ;;  %v4352_v36 = vsel %vm3738_vm5, %v4346_v15, 0.0  ;;  %v4573_v20 = vsel %vm3738_vm5, %v4569_v16, 0.0 }
 0x41a   :  { %4517 = vrot.lane.b32.xlu1 %v4361_v62, %s6691_s10  ;;  %v4365_v6 = vsel %vm3738_vm5, %v4361_v62, 0.0  ;;  %v4364_v42 = vmul.f32 %v4312_v30, %v4312_v30  ;;  %v7686_v26 = vadd.f32 %v4305_v52, %v4216_v24  ;;  %v4484_v17 = vmul.f32 %v4476_v10, %v4312_v30 }
 0x41b   :  { %v4348_v2 = vmul.f32 %v4312_v30, %v7597_v40  ;;  %v4431_v62 = vsel %vm4430_vm6, %v7664_v41, %v4429_v21 }
 0x41c   :  { %v4363_v54 = vmul.f32 %v7686_v26, %v7686_v26  ;;  %v4483_v3 = vmul.f32 %v4474_v46, %v7686_v26  ;;  %v4374_v34 = vsel %vm3738_vm5, %v4364_v42, 0.0  ;;  %v4347_v5 = vmul.f32 %v7686_v26, %v7590_v44 }
 0x41d   :  { %v4358_v22 = vsel %vm3738_vm5, %v4348_v2, 0.0 }
 0x41e   :  { %v4371_v43 = vsel %vm3738_vm5, %v4363_v54, 0.0  ;;  %v4355_v27 = vsel %vm3738_vm5, %v4347_v5, 0.0 }
 0x437   :  { %4369 = vadd.xlane.f32.xlu0 %v4368_v61 }
 0x43e   :  { %4366 = vadd.xlane.f32.xlu1 %v4365_v6  ;;  %v4433_v6 = vand.u32 2147483648, %v7664_v41  ;;  %v4345_v41 = vmul.f32 %v7672_v9, %v7583_v55 }
 0x440   :  { %v4434_v56 = vsel %vm4432_vm8, %v4433_v6, %v4431_v62  ;;  %v4349_v44 = vsel %vm3738_vm5, %v4345_v41, 0.0 }
 0x442   :  { %4410 = vadd.xlane.f32.xlu1 %v4409_v11 }
 0x44d   :  { %4523 = vrot.lane.b32.xlu0 %v4364_v42, %s6691_s10 }
 0x451   :  { %4495 = vrot.lane.b32.xlu0 %v4484_v17, %s6691_s10 }
 0x453   :  { %4521 = vrot.lane.b32.xlu1 %v4363_v54, %s6691_s10 }
 0x457   :  { %4493 = vrot.lane.b32.xlu1 %v4483_v3, %s6691_s10  ;;  %v4319_v3 = vmul.f32 %v7632_v49, %v7632_v49 }
 0x459   :  { %v4320_v35 = vsel %vm3738_vm5, %v4319_v3, 0.0 }
 0x470   :  { %4375 = vadd.xlane.f32.xlu0 %v4374_v34 }
 0x47b   :  { %4372 = vadd.xlane.f32.xlu1 %v4371_v43 }
 0x486   :  { %4491 = vrot.lane.b32.xlu0 %v4482_v37, %s6691_s10  ;;  %v4315_v37 = vmul.f32 %v7632_v49, %v7578_v32 }
 0x48a   :  { %v4520_v1 = vpop.permute.xlu0 %4519 }
 0x48b   :  { %v4532_v28 = vsel %vm3738_vm5, %v4520_v1, 0.0  ;;  %v4330_v1 = vmul.f32 %v7578_v32, %v7578_v32 }
 0x48c   :  { %4489 = vrot.lane.b32.xlu1 %v4481_v14, %s6691_s10  ;;  %v4518_v59 = vpop.permute.xlu1 %4517 }
 0x48d   :  { %v4529_v12 = vsel %vm3738_vm5, %v4518_v59, 0.0 }
 0x4a5   :  { %4580 = vadd.xlane.f32.xlu0 %v4579_v58  ;;  %v4316_v58 = vsel %vm3738_vm5, %v4315_v37, 0.0 }
 0x4a9   :  { %4577 = vadd.xlane.f32.xlu0 %v4576_v53 }
 0x4ad   :  { %4533 = vadd.xlane.f32.xlu0 %v4532_v28  ;;  %v4331_v28 = vsel %vm3738_vm5, %v4330_v1, 0.0 }
 0x4b0   :  { %4583 = vadd.xlane.f32.xlu1 %v4582_v60 }
 0x4b1   :  { %4530 = vadd.xlane.f32.xlu0 %v4529_v12  ;;  %v4440_v12 = vand.u32 2147483648, %v7666_v8 }
 0x4b4   :  { %4359 = vadd.xlane.f32.xlu1 %v4358_v22 }
 0x4b8   :  { %4353 = vadd.xlane.f32.xlu1 %v4352_v36 }
 0x4c0   :  { %v4370_v25 = vpop.xlane.xlu0 %4369 }
 0x4c1   :  { %6603 = vrsqrt.f32 %v4370_v25  ;;  %vm4386_vm7 = vcmp.eq.f32.partialorder %v4370_v25, inf  ;;  %v4389_v48 = vand.u32 2147483648, %v4370_v25  ;;  %vm4388_vm9 = vcmp.eq.f32.partialorder %v4370_v25, 0.0 }
 0x4c4   :  { %v4524_v39 = vpop.permute.xlu0 %4523 }
 0x4c5   :  { %v4538_v40 = vsel %vm3738_vm5, %v4524_v39, 0.0 }
 0x4c6   :  { %4539 = vadd.xlane.f32.xlu0 %v4538_v40 }
 0x4c7   :  { %v4367_v13 = vpop.xlane.xlu1 %4366 }
 0x4c8   :  { %6605 = vrsqrt.f32 %v4367_v13  ;;  %v4496_v18 = vpop.permute.xlu0 %4495  ;;  %vm4379_vm10 = vcmp.eq.f32.partialorder %v4367_v13, inf  ;;  %v4382_v52 = vand.u32 2147483648, %v4367_v13  ;;  %vm4381_vm12 = vcmp.eq.f32.partialorder %v4367_v13, 0.0 }
 0x4c9   :  { %v4510_v0 = vsel %vm3738_vm5, %v4496_v18, 0.0 }
 0x4ca   :  { %4511 = vadd.xlane.f32.xlu1 %v4510_v0 }
 0x4cb   :  { %v4411_v29 = vpop.xlane.xlu1 %4410 }
 0x4cc   :  { %6607 = vrsqrt.f32 %v4411_v29  ;;  %vm4423_vm11 = vcmp.eq.f32.partialorder %v4411_v29, inf  ;;  %v4426_v24 = vand.u32 2147483648, %v4411_v29  ;;  %vm4425_vm13 = vcmp.eq.f32.partialorder %v4411_v29, 0.0 }
 0x4cd   :  { %6609 = vrsqrt.f32 %v7666_v8 }
 0x4ce   :  { %v6604_v38 = vpop.eup %6603 }
 0x4cf   :  { %v4385_v14 = vmul.f32 %v6604_v38, %v4370_v25  ;;  %v4522_v61 = vpop.permute.xlu1 %4521 }
 0x4d0   :  { %v4535_v45 = vsel %vm3738_vm5, %v4522_v61, 0.0 }
 0x4d1   :  { %v4387_v23 = vsel %vm4386_vm7, %v4370_v25, %v4385_v14  ;;  %4536 = vadd.xlane.f32.xlu0 %v4535_v45  ;;  %vm4446_vm7 = vcmp.eq.f32.partialorder %v7668_v57, 0.0 }
 0x4d2   :  { %v4390_v11 = vsel %vm4388_vm9, %v4389_v48, %v4387_v23  ;;  %v7767_v48 = vld [vmem:[%s8037_s6 + $0x18] sm:$0xff] }
 0x4d3   :  { %v7727_v50 = vmul.f32 %v4434_v56, %v4390_v11  ;;  %v4494_v17 = vpop.permute.xlu1 %4493 }
 0x4d4   :  { %v4507_v55 = vsel %vm3738_vm5, %v4494_v17, 0.0 }
 0x4d5   :  { %v6606_v47 = vpop.eup %6605  ;;  %4574 = vadd.xlane.f32.xlu0 %v4573_v20 }
 0x4d6   :  { %v4378_v51 = vmul.f32 %v6606_v47, %v4367_v13 }
 0x4d8   :  { %v4380_v46 = vsel %vm4379_vm10, %v4367_v13, %v4378_v51  ;;  %v4454_v51 = vmax.f32 %v7727_v50, 1e-08 }
 0x4d9   :  { %v6608_v30 = vpop.eup %6607  ;;  %4356 = vadd.xlane.f32.xlu0 %v4355_v27  ;;  %v4383_v26 = vsel %vm4381_vm12, %v4382_v52, %v4380_v46  ;;  %v4629_v52 = vld [vmem:[%s8036_s5] sm:$0xff] }
 0x4da   :  { %v4422_v33 = vmul.f32 %v6608_v30, %v4411_v29  ;;  %v6610_v19 = vpop.eup %6609  ;;  %v4639_v50 = vsel %vm2876_vm4, %v4629_v52, 0 }
 0x4db   :  { %v4436_v49 = vmul.f32 %v6610_v19, %v7666_v8 }
 0x4dc   :  { %v4424_v42 = vsel %vm4423_vm11, %v4411_v29, %v4422_v33 }
 0x4dd   :  { %v4427_v10 = vsel %vm4425_vm13, %v4426_v24, %v4424_v42  ;;  %4350 = vadd.xlane.f32.xlu0 %v4349_v44  ;;  %v4438_v60 = vsel %vm4437_vm14, %v7666_v8, %v4436_v49  ;;  %v4447_v8 = vand.u32 2147483648, %v7668_v57 }
 0x4de   :  { %v7736_v54 = vmul.f32 %v4427_v10, %v4383_v26  ;;  %v4441_v15 = vsel %vm4439_vm0, %v4440_v12, %v4438_v60  ;;  %v7795_v26 = vand.u32 4294901760, %v4639_v50  ;;  %v7821_v12 = vld [vmem:[%s8037_s6 + $0x10] sm:$0xff] }
 0x4e0   :  { %v4453_v24 = vmax.f32 %v7736_v54, 1e-08  ;;  %v7808_v54 = vsub.f32 %v4639_v50, %v7795_v26 }
 0x4e1   :  { %4508 = vadd.xlane.f32.xlu0 %v4507_v55 }
 0x4f9   :  { %v4376_v9 = vpop.xlane.xlu0 %4375 }
 0x4fa   :  { %vm4400_vm3 = vcmp.eq.f32.partialorder %v4376_v9, inf  ;;  %v4403_v0 = vand.u32 2147483648, %v4376_v9  ;;  %vm4402_vm6 = vcmp.eq.f32.partialorder %v4376_v9, 0.0 }
 0x4fd   :  { %v4492_v34 = vpop.permute.xlu0 %4491 }
 0x4fe   :  { %v4504_v43 = vsel %vm3738_vm5, %v4492_v34, 0.0 }
 0x4ff   :  { %4505 = vadd.xlane.f32.xlu1 %v4504_v43 }
 0x503   :  { %4321 = vadd.xlane.f32.xlu1 %v4320_v35 }
 0x504   :  { %v4373_v31 = vpop.xlane.xlu1 %4372 }
 0x505   :  { %6611 = vrsqrt.f32 %v4373_v31  ;;  %vm4393_vm15 = vcmp.eq.f32.partialorder %v4373_v31, inf  ;;  %v4396_v32 = vand.u32 2147483648, %v4373_v31  ;;  %vm4395_vm2 = vcmp.eq.f32.partialorder %v4373_v31, 0.0 }
 0x506   :  { %6613 = vrsqrt.f32 %v4376_v9 }
 0x507   :  { %4317 = vadd.xlane.f32.xlu1 %v4316_v58  ;;  %6615 = vrsqrt.f32 %v7668_v57 }
 0x508   :  { %v4490_v63 = vpop.permute.xlu1 %4489 }
 0x509   :  { %v4501_v53 = vsel %vm3738_vm5, %v4490_v63, 0.0  ;;  %vm4444_vm5 = vcmp.eq.f32.partialorder %v7668_v57, inf }
 0x50a   :  { %4502 = vadd.xlane.f32.xlu0 %v4501_v53  ;;  %v7814_v53 = vand.u32 4294901760, %v7808_v54 }
 0x50e   :  { %4332 = vadd.xlane.f32.xlu0 %v4331_v28 }
 0x512   :  { %v6612_v59 = vpop.eup %6611 }
 0x513   :  { %v4392_v2 = vmul.f32 %v6612_v59, %v4373_v31  ;;  %v6614_v39 = vpop.eup %6613 }
 0x514   :  { %v6616_v40 = vpop.eup %6615  ;;  %v4399_v13 = vmul.f32 %v6614_v39, %v4376_v9 }
 0x515   :  { %v4394_v22 = vsel %vm4393_vm15, %v4373_v31, %v4392_v2  ;;  %v4443_v7 = vmul.f32 %v6616_v40, %v7668_v57 }
 0x516   :  { %v4397_v36 = vsel %vm4395_vm2, %v4396_v32, %v4394_v22  ;;  %v4401_v18 = vsel %vm4400_vm3, %v4376_v9, %v4399_v13  ;;  %v7802_v9 = vld [vmem:[%s8037_s6 + $0x8] sm:$0xff] }
 0x517   :  { %v4451_v25 = vmul.f32 %v4441_v15, %v4397_v36  ;;  %v4445_v21 = vsel %vm4444_vm5, %v7668_v57, %v4443_v7  ;;  %v4404_v29 = vsel %vm4402_vm6, %v4403_v0, %v4401_v18  ;;  %v4713_v15 = vsub.f32 %v7808_v54, %v7814_v53  ;;  %v7835_v18 = vld [vmem:[%s8037_s6] sm:$0xff]  ;;  %s6692_s6 = smov 1  }
 0x518   :  { %v4448_v38 = vsel %vm4446_vm7, %v4447_v8, %v4445_v21 }
 0x519   :  { %v4452_v62 = vmul.f32 %v4448_v38, %v4404_v29  ;;  %v4455_v33 = vmax.f32 %v4451_v25, 1e-08  ;;  %v7840_v38 = vand.u32 4294901760, %v4713_v15 }
 0x51b   :  { %v4456_v14 = vmax.f32 %v4452_v62, 1e-08 }
 0x51d   :  { %6617 = vrcp.f32 %v4456_v14 }
 0x52a   :  { %v6618_v6 = vpop.eup %6617 }
 0x52e   :  { %v7762_v61 = vpop.xlane.xlu0 %4580 }
 0x52f   :  { %vm4601_vm11 = vcmp.eq.f32.partialorder %v7762_v61, inf  ;;  %vm4603_vm12 = vcmp.eq.f32.partialorder %v7762_v61, 0.0 }
 0x532   :  { %v7769_v56 = vpop.xlane.xlu0 %4577 }
 0x533   :  { %vm4594_vm0 = vcmp.eq.f32.partialorder %v7769_v56, inf  ;;  %vm4596_vm3 = vcmp.eq.f32.partialorder %v7769_v56, 0.0 }
 0x536   :  { %v7778_v5 = vpop.xlane.xlu0 %4533 }
 0x537   :  { %vm4550_vm13 = vcmp.eq.f32.partialorder %v7778_v5, inf  ;;  %vm4552_vm2 = vcmp.eq.f32.partialorder %v7778_v5, 0.0 }
 0x539   :  { %v4584_v16 = vpop.xlane.xlu1 %4583 }
 0x53a   :  { %6619 = vrsqrt.f32 %v4584_v16  ;;  %v7786_v30 = vpop.xlane.xlu0 %4530  ;;  %vm4608_vm4 = vcmp.eq.f32.partialorder %v4584_v16, inf  ;;  %v4611_v58 = vand.u32 2147483648, %v4584_v16  ;;  %vm4610_vm9 = vcmp.eq.f32.partialorder %v4584_v16, 0.0 }
 0x53b   :  { %6621 = vrcp.f32 %v4454_v51  ;;  %vm4543_vm6 = vcmp.eq.f32.partialorder %v7786_v30, inf }
 0x53d   :  { %v4360_v45 = vpop.xlane.xlu1 %4359 }
 0x53e   :  { %v4464_v23 = vmul.f32 %v6618_v6, %v4360_v45 }
 0x540   :  { %v4637_v11 = vmul.f32 %v7767_v48, %v4464_v23 }
 0x541   :  { %v4354_v42 = vpop.xlane.xlu1 %4353 }
 0x542   :  { %v7772_v57 = vand.u32 4294901760, %v4637_v11 }
 0x544   :  { %v7775_v20 = vsub.f32 %v4637_v11, %v7772_v57  ;;  %6461 = vmatpush3.msra.mxu0 %v7772_v57 }
 0x545   :  { %6462 = vmatprep.subr.mxu0 %v8105_v4 }
 0x546   :  { %v4747_v47 = vand.u32 4294901760, %v7775_v20 }
 0x547   :  { %v6620_v44 = vpop.eup %6619 }
 0x548   :  { %v4748_v27 = vsub.f32 %v7775_v20, %v4747_v47  ;;  %v6622_v10 = vpop.eup %6621  ;;  %v4607_v55 = vmul.f32 %v6620_v44, %v4584_v16 }
 0x549   :  { %v4460_v17 = vmul.f32 %v6622_v10, %v4354_v42 }
 0x54a   :  { %v4749_v41 = vand.u32 4294901760, %v4748_v27  ;;  %v4609_v35 = vsel %vm4608_vm4, %v4584_v16, %v4607_v55  ;;  %v4604_v16 = vand.u32 2147483648, %v7762_v61  ;;  %v4553_v55 = vand.u32 2147483648, %v7778_v5 }
 0x54b   :  { %v4635_v43 = vmul.f32 %v7802_v9, %v4460_v17  ;;  %v4612_v28 = vsel %vm4610_vm9, %v4611_v58, %v4609_v35  ;;  %vm4545_vm4 = vcmp.eq.f32.partialorder %v7786_v30, 0.0 }
 0x54c   :  { %6472 = vmatpush3.msra.mxu1 %v4749_v41 }
 0x54d   :  { %6473 = vmatprep.subr.mxu1 %v8105_v4  ;;  %v7816_v49 = vand.u32 4294901760, %v4635_v43 }
 0x54f   :  { %v4540_v46 = vpop.xlane.xlu0 %4539  ;;  %v7829_v40 = vsub.f32 %v4635_v43, %v7816_v49 }
 0x550   :  { %6623 = vrsqrt.f32 %v4540_v46  ;;  %vm4564_vm8 = vcmp.eq.f32.partialorder %v4540_v46, inf  ;;  %v4567_v63 = vand.u32 2147483648, %v4540_v46  ;;  %vm4566_vm10 = vcmp.eq.f32.partialorder %v4540_v46, 0.0 }
 0x551   :  { %6625 = vrsqrt.f32 %v7762_v61  ;;  %v4761_v45 = vand.u32 4294901760, %v7829_v40 }
 0x552   :  { %6627 = vrcp.f32 %v4455_v33 }
 0x553   :  { %6629 = vrsqrt.f32 %v7778_v5 }
 0x554   :  { %6631 = vrcp.f32 %v4453_v24 }
 0x555   :  { %6633 = vrsqrt.f32 %v7769_v56 }
 0x55a   :  { %v7804_v3 = vpop.xlane.xlu0 %4536 }
 0x55b   :  { %6635 = vrsqrt.f32 %v7804_v3  ;;  %vm4557_vm14 = vcmp.eq.f32.partialorder %v7804_v3, inf  ;;  %v4560_v41 = vand.u32 2147483648, %v7804_v3  ;;  %vm4559_vm15 = vcmp.eq.f32.partialorder %v7804_v3, 0.0 }
 0x55d   :  { %v6624_v34 = vpop.eup %6623 }
 0x55e   :  { %v4563_v37 = vmul.f32 %v6624_v34, %v4540_v46  ;;  %v7811_v31 = vpop.xlane.xlu0 %4574  ;;  %v6626_v19 = vpop.eup %6625 }
 0x55f   :  { %v6628_v60 = vpop.eup %6627  ;;  %v4600_v36 = vmul.f32 %v6626_v19, %v7762_v61  ;;  %6637 = vrsqrt.f32 %v7811_v31  ;;  %vm4587_vm5 = vcmp.eq.f32.partialorder %v7811_v31, inf  ;;  %vm4589_vm7 = vcmp.eq.f32.partialorder %v7811_v31, 0.0 }
 0x560   :  { %v4565_v1 = vsel %vm4564_vm8, %v4540_v46, %v4563_v37  ;;  %v6630_v39 = vpop.eup %6629  ;;  %6639 = vrsqrt.f32 %v7786_v30  ;;  %v4597_v37 = vand.u32 2147483648, %v7769_v56 }
 0x561   :  { %v4568_v59 = vsel %vm4566_vm10, %v4567_v63, %v4565_v1  ;;  %v6632_v7 = vpop.eup %6631  ;;  %v4602_v14 = vsel %vm4601_vm11, %v7762_v61, %v4600_v36  ;;  %v4549_v6 = vmul.f32 %v6630_v39, %v7778_v5  ;;  %v4762_v61 = vsub.f32 %v7829_v40, %v4761_v45 }
 0x562   :  { %v4616_v2 = vmul.f32 %v4612_v28, %v4568_v59  ;;  %v4357_v32 = vpop.xlane.xlu0 %4356  ;;  %v6634_v21 = vpop.eup %6633  ;;  %v4605_v50 = vsel %vm4603_vm12, %v4604_v16, %v4602_v14  ;;  %vm5623_vm11 = vcmask 7168   ;;  %vm5625_vm12 = vcmask 39936  }
 0x563   :  { %v4462_v22 = vmul.f32 %v6628_v60, %v4357_v32  ;;  %v4593_v27 = vmul.f32 %v6634_v21, %v7769_v56  ;;  %v4551_v24 = vsel %vm4550_vm13, %v7778_v5, %v4549_v6  ;;  %v4763_v63 = vand.u32 4294901760, %v4762_v61 }
 0x564   :  { %v4620_v25 = vmax.f32 %v4616_v2, 1e-08  ;;  %v4554_v58 = vsel %vm4552_vm2, %v4553_v55, %v4551_v24  ;;  %v4512_v2 = vpop.xlane.xlu1 %4511  ;;  %vm5630_vm13 = vcmask 72704  }
 0x565   :  { %v4636_v13 = vmul.f32 %v7821_v12, %v4462_v22 }
 0x566   :  { %6641 = vrcp.f32 %v4620_v25  ;;  %v4351_v0 = vpop.xlane.xlu0 %4350 }
 0x567   :  { %v7838_v8 = vand.u32 4294901760, %v4636_v13  ;;  %v4458_v29 = vmul.f32 %v6632_v7, %v4351_v0 }
 0x568   :  { %v6636_v62 = vpop.eup %6635 }
 0x569   :  { %v4556_v23 = vmul.f32 %v6636_v62, %v7804_v3  ;;  %v7849_v11 = vsub.f32 %v4636_v13, %v7838_v8  ;;  %v4634_v51 = vmul.f32 %v7835_v18, %v4458_v29  ;;  %6463 = vmatpush3.msra.mxu0 %v7838_v8 }
 0x56a   :  { %6464 = vmatprep.subr.mxu0 %v8105_v4  ;;  %v4509_v62 = vpop.xlane.xlu0 %4508 }
 0x56b   :  { %v4558_v46 = vsel %vm4557_vm14, %v7804_v3, %v4556_v23  ;;  %v4754_v33 = vand.u32 4294901760, %v7849_v11  ;;  %v7861_v52 = vand.u32 4294901760, %v4634_v51  ;;  %6465 = vmatpush3.msra.mxu0 %v7816_v49  ;;  %v4595_v3 = vsel %vm4594_vm0, %v7769_v56, %v4593_v27 }
 0x56c   :  { %v4561_v42 = vsel %vm4559_vm15, %v4560_v41, %v4558_v46  ;;  %6466 = vmatprep.subr.mxu0 %v8105_v4  ;;  %v6638_v5 = vpop.eup %6637  ;;  %v4598_v28 = vsel %vm4596_vm3, %v4597_v37, %v4595_v3  ;;  %vm5663_vm14 = vcmask 0  }
 0x56d   :  { %v4615_v44 = vmul.f32 %v4605_v50, %v4561_v42  ;;  %v7869_v10 = vsub.f32 %v4634_v51, %v7861_v52  ;;  %6467 = vmatpush3.msra.mxu0 %v7861_v52  ;;  %v4755_v17 = vsub.f32 %v7849_v11, %v4754_v33  ;;  %v6640_v19 = vpop.eup %6639  ;;  %v4614_v60 = vmul.f32 %v4598_v28, %v4554_v58 }
 0x56e   :  { %6482 = vmatprep.subr.mxu0 %v8105_v4  ;;  %6469 = vmatmul.mubr.f32.vlgmr.msra.gmra.mxu0 %v7840_v38  ;;  %v4586_v22 = vmul.f32 %v6638_v5, %v7811_v31  ;;  %v4542_v15 = vmul.f32 %v6640_v19, %v7786_v30 }
 0x56f   :  { %v4768_v34 = vand.u32 4294901760, %v7869_v10  ;;  %v4619_v43 = vmax.f32 %v4615_v44, 1e-08  ;;  %6483 = vmatpush3.msra.mxu0 %v7775_v20  ;;  %v4756_v35 = vand.u32 4294901760, %v4755_v17  ;;  %6490 = vmatprep.mubr.msk.f32.mxu0 %vm6688_vm1, %v8105_v4  ;;  %v4618_v25 = vmax.f32 %v4614_v60, 1e-08 }
 0x570   :  { %6484 = vmatprep.subr.mxu0 %v8105_v4  ;;  %v4588_v13 = vsel %vm4587_vm5, %v7811_v31, %v4586_v22  ;;  %v4544_v7 = vsel %vm4543_vm6, %v7786_v30, %v4542_v15  ;;  %v4546_v20 = vand.u32 2147483648, %v7786_v30 }
 0x571   :  { %6643 = vrcp.f32 %v4619_v43  ;;  %6474 = vmatpush3.msra.mxu1 %v4756_v35  ;;  %6485 = vmatpush3.msra.mxu0 %v7849_v11  ;;  %v4769_v1 = vsub.f32 %v7869_v10, %v4768_v34 }
 0x572   :  { %6475 = vmatprep.subr.mxu1 %v8105_v4  ;;  %6486 = vmatprep.subr.mxu0 %v8105_v4  ;;  %6645 = vrcp.f32 %v4618_v25 }
 0x573   :  { %v6642_v59 = vpop.eup %6641  ;;  %6476 = vmatpush3.msra.mxu1 %v4763_v63  ;;  %6487 = vmatpush3.msra.mxu0 %v7829_v40  ;;  %v4770_v56 = vand.u32 4294901760, %v4769_v1 }
 0x574   :  { %v4628_v32 = vmul.f32 %v6642_v59, %v4512_v2  ;;  %6477 = vmatprep.subr.mxu1 %v8105_v4  ;;  %6488 = vmatprep.subr.mxu0 %v8105_v4 }
 0x575   :  { %6478 = vmatpush3.msra.mxu1 %v4770_v56  ;;  %6489 = vmatpush3.msra.mxu0 %v7869_v10 }
 0x576   :  { %v5129_v36 = vmul.f32 %v7767_v48, %v4628_v32  ;;  %6493 = vmatprep.subr.mxu1 %v8105_v4  ;;  %6504 = vmatprep.subr.mxu0 %v8105_v4  ;;  %v4590_v48 = vand.u32 2147483648, %v7811_v31  ;;  %v4547_v31 = vsel %vm4545_vm4, %v4546_v20, %v4544_v7 }
 0x577   :  { %6480 = vmatmul.mubr.f32.vlgmr.msra.gmra.mxu1 %v7795_v26  ;;  %6491 = vmatmul.mubr.f32.vlgmr.msra.gmra.mxu0 %v7808_v54 }
 0x578   :  { %v7909_v39 = vand.u32 4294901760, %v5129_v36  ;;  %6494 = vmatpush3.msra.mxu1 %v7772_v57  ;;  %6505 = vmatpush3.msra.mxu0 %v4747_v47  ;;  %v4591_v47 = vsel %vm4589_vm7, %v4590_v48, %v4588_v13 }
 0x579   :  { %6495 = vmatprep.subr.mxu1 %v8105_v4  ;;  %6506 = vmatprep.subr.mxu0 %v8105_v4  ;;  %v4613_v29 = vmul.f32 %v4591_v47, %v4547_v31 }
 0x57a   :  { %6496 = vmatpush3.msra.mxu1 %v7838_v8  ;;  %6507 = vmatpush3.msra.mxu0 %v4754_v33  ;;  %v7929_v0 = vsub.f32 %v5129_v36, %v7909_v39 }
 0x57b   :  { %6497 = vmatprep.subr.mxu1 %v8105_v4  ;;  %6508 = vmatprep.subr.mxu0 %v8105_v4  ;;  %v4617_v16 = vmax.f32 %v4613_v29, 1e-08 }
 0x57c   :  { %6498 = vmatpush3.msra.mxu1 %v7816_v49  ;;  %6509 = vmatpush3.msra.mxu0 %v4761_v45  ;;  %v5236_v40 = vand.u32 4294901760, %v7929_v0 }
 0x57d   :  { %6499 = vmatprep.subr.mxu1 %v8105_v4  ;;  %6510 = vmatprep.subr.mxu0 %v8105_v4  ;;  %6647 = vrcp.f32 %v4617_v16 }
 0x57e   :  { %v6644_v21 = vpop.eup %6643  ;;  %6500 = vmatpush3.msra.mxu1 %v7861_v52  ;;  %6511 = vmatpush3.msra.mxu0 %v4768_v34 }
 0x57f   :  { %v4626_v30 = vmul.f32 %v6644_v21, %v4509_v62  ;;  %6501 = vmatprep.mubr.msk.f32.mxu1 %vm6688_vm1, %v8105_v4  ;;  %6512 = vmatprep.mubr.msk.f32.mxu0 %vm6688_vm1, %v8105_v4  ;;  %v6646_v45 = vpop.eup %6645 }
 0x580   :  { %6515 = vmatprep.subr.mxu1 %v8105_v4  ;;  %6526 = vmatprep.subr.mxu0 %v8105_v4 }
 0x581   :  { %v5128_v14 = vmul.f32 %v7821_v12, %v4626_v30  ;;  %6502 = vmatmul.mubr.f32.vlgmr.msra.gmra.mxu1 %v7814_v53  ;;  %6513 = vmatmul.mubr.f32.vlgmr.msra.gmra.mxu0 %v7795_v26  ;;  %v5237_v12 = vsub.f32 %v7929_v0, %v5236_v40 }
 0x582   :  { %6516 = vmatpush3.msra.mxu1 %v7772_v57  ;;  %6527 = vmatpush3.msra.mxu0 %v7909_v39 }
 0x583   :  { %v7951_v6 = vand.u32 4294901760, %v5128_v14  ;;  %6517 = vmatprep.subr.mxu1 %v8105_v4  ;;  %6528 = vmatprep.subr.mxu0 %v8105_v4  ;;  %v5238_v23 = vand.u32 4294901760, %v5237_v12 }
 0x584   :  { %6518 = vmatpush3.msra.mxu1 %v7838_v8  ;;  %6523 = vmatprep.mubr.msk.f32.mxu1 %vm6688_vm1, %v8105_v4 }
 0x585   :  { %v7962_v57 = vsub.f32 %v5128_v14, %v7951_v6  ;;  %6519 = vmatprep.subr.mxu1 %v8105_v4  ;;  %6529 = vmatpush3.msra.mxu0 %v7951_v6 }
 0x586   :  { %6520 = vmatpush3.msra.mxu1 %v7816_v49  ;;  %6530 = vmatprep.subr.mxu0 %v8105_v4 }
 0x587   :  { %v5243_v8 = vand.u32 4294901760, %v7962_v57  ;;  %6521 = vmatprep.subr.mxu1 %v8105_v4  ;;  %6534 = vmatprep.mubr.msk.f32.mxu0 %vm6688_vm1, %v8105_v4 }
 0x588   :  { %6522 = vmatpush3.msra.mxu1 %v7861_v52  ;;  %v4506_v11 = vpop.xlane.xlu1 %4505 }
 0x589   :  { %6524 = vmatmul.mubr.f32.vlgmr.msra.gmra.mxu1 %v7795_v26  ;;  %6537 = vmatprep.subr.mxu1 %v8105_v4  ;;  %v4624_v49 = vmul.f32 %v6646_v45, %v4506_v11  ;;  %v5244_v51 = vsub.f32 %v7962_v57, %v5243_v8 }
 0x58a   :  { %6538 = vmatpush3.msra.mxu1 %v5238_v23  ;;  %6545 = vmatprep.mubr.msk.f32.mxu1 %vm6688_vm1, %v8105_v4  ;;  %v6648_v50 = vpop.eup %6647 }
 0x58b   :  { %v5127_v27 = vmul.f32 %v7802_v9, %v4624_v49  ;;  %6539 = vmatprep.subr.mxu1 %v8105_v4  ;;  %v5245_v41 = vand.u32 4294901760, %v5244_v51 }
 0x58c   :  { %v4322_v30 = vpop.xlane.xlu1 %4321 }
 0x58d   :  { %v5161_v46 = vand.u32 4294901760, %v5127_v27  ;;  %6540 = vmatpush3.msra.mxu1 %v5245_v41  ;;  %6649 = vrsqrt.f32 %v4322_v30  ;;  %v4328_v12 = vand.u32 2147483648, %v4322_v30  ;;  %vm4327_vm9 = vcmp.eq.f32.partialorder %v4322_v30, 0.0 }
 0x58e   :  { %6541 = vmatprep.subr.mxu1 %v8105_v4 }
 0x58f   :  { %v5249_v33 = vsub.f32 %v5127_v27, %v5161_v46  ;;  %6531 = vmatpush3.msra.mxu0 %v5161_v46 }
 0x590   :  { %6532 = vmatprep.subr.mxu0 %v8105_v4  ;;  %v4318_v41 = vpop.xlane.xlu1 %4317 }
 0x591   :  { %v5250_v52 = vand.u32 4294901760, %v5249_v33 }
 0x593   :  { %v4503_v24 = vpop.xlane.xlu0 %4502  ;;  %v5251_v42 = vsub.f32 %v5249_v33, %v5250_v52 }
 0x594   :  { %v4622_v44 = vmul.f32 %v6648_v50, %v4503_v24 }
 0x595   :  { %v5252_v10 = vand.u32 4294901760, %v5251_v42 }
 0x596   :  { %v5126_v17 = vmul.f32 %v7835_v18, %v4622_v44 }
 0x597   :  { %6542 = vmatpush3.msra.mxu1 %v5252_v10  ;;  %v4333_v62 = vpop.xlane.xlu0 %4332 }
 0x598   :  { %v5164_v9 = vand.u32 4294901760, %v5126_v17  ;;  %6543 = vmatprep.subr.mxu1 %v8105_v4  ;;  %6651 = vrsqrt.f32 %v4333_v62  ;;  %vm4336_vm8 = vcmp.eq.f32.partialorder %v4333_v62, inf  ;;  %v4339_v45 = vand.u32 2147483648, %v4333_v62 }
 0x599   :  { %vm4338_vm10 = vcmp.eq.f32.partialorder %v4333_v62, 0.0 }
 0x59a   :  { %v5256_v61 = vsub.f32 %v5126_v17, %v5164_v9  ;;  %6533 = vmatpush3.msra.mxu0 %v5164_v9 }
 0x59b   :  { %6548 = vmatprep.subr.mxu0 %v8105_v4  ;;  %6535 = vmatmul.mubr.f32.vlgmr.msra.gmra.mxu0 %v7840_v38 }
 0x59c   :  { %v5257_v55 = vand.u32 4294901760, %v5256_v61  ;;  %6549 = vmatpush3.msra.mxu0 %v7929_v0  ;;  %6556 = vmatprep.mubr.msk.f32.mxu0 %vm6688_vm1, %v8105_v4 }
 0x59d   :  { %6550 = vmatprep.subr.mxu0 %v8105_v4 }
 0x59e   :  { %6551 = vmatpush3.msra.mxu0 %v7962_v57  ;;  %v5258_v18 = vsub.f32 %v5256_v61, %v5257_v55 }
 0x59f   :  { %6552 = vmatprep.subr.mxu0 %v8105_v4 }
 0x5a0   :  { %6553 = vmatpush3.msra.mxu0 %v5249_v33  ;;  %v5259_v3 = vand.u32 4294901760, %v5258_v18 }
 0x5a1   :  { %6554 = vmatprep.subr.mxu0 %v8105_v4 }
 0x5a2   :  { %6544 = vmatpush3.msra.mxu1 %v5259_v3  ;;  %6555 = vmatpush3.msra.mxu0 %v5256_v61 }
 0x5a3   :  { %6559 = vmatprep.subr.mxu1 %v8105_v4  ;;  %6570 = vmatprep.subr.mxu0 %v8105_v4 }
 0x5a4   :  { %6546 = vmatmul.mubr.f32.vlgmr.msra.gmra.mxu1 %v7795_v26  ;;  %6557 = vmatmul.mubr.f32.vlgmr.msra.gmra.mxu0 %v7808_v54 }
 0x5a5   :  { %6560 = vmatpush3.msra.mxu1 %v7909_v39  ;;  %6571 = vmatpush3.msra.mxu0 %v5236_v40  ;;  %v6650_v40 = vpop.eup %6649 }
 0x5a6   :  { %6561 = vmatprep.subr.mxu1 %v8105_v4  ;;  %6572 = vmatprep.subr.mxu0 %v8105_v4  ;;  %v6652_v14 = vpop.eup %6651  ;;  %v4324_v16 = vmul.f32 %v6650_v40, %v4322_v30 }
 0x5a7   :  { %6562 = vmatpush3.msra.mxu1 %v7951_v6  ;;  %6573 = vmatpush3.msra.mxu0 %v5243_v8 }
 0x5a8   :  { %6563 = vmatprep.subr.mxu1 %v8105_v4  ;;  %6574 = vmatprep.subr.mxu0 %v8105_v4 }
 0x5a9   :  { %6564 = vmatpush3.msra.mxu1 %v5161_v46  ;;  %6575 = vmatpush3.msra.mxu0 %v5250_v52 }
 0x5aa   :  { %6565 = vmatprep.subr.mxu1 %v8105_v4  ;;  %6576 = vmatprep.subr.mxu0 %v8105_v4 }
 0x5ab   :  { %6566 = vmatpush3.msra.mxu1 %v5164_v9  ;;  %6577 = vmatpush3.msra.mxu0 %v5257_v55 }
 0x5ac   :  { %6567 = vmatprep.mubr.msk.f32.mxu1 %vm6688_vm1, %v8105_v4  ;;  %6581 = vmatprep.subr.mxu1 %v8105_v4 }
 0x5ad   :  { %6568 = vmatmul.mubr.f32.vlgmr.msra.gmra.mxu1 %v7814_v53  ;;  %6578 = vmatprep.mubr.msk.f32.mxu0 %vm6688_vm1, %v8105_v4 }
 0x5ae   :  { %6582 = vmatpush3.msra.mxu1 %v7909_v39  ;;  %6579 = vmatmul.mubr.f32.vlgmr.msra.gmra.mxu0 %v7795_v26 }
 0x5af   :  { %6583 = vmatprep.subr.mxu1 %v8105_v4  ;;  %6589 = vmatprep.mubr.msk.f32.mxu1 %vm6688_vm1, %v8105_v4  ;;  %vm4325_vm1 = vcmp.eq.f32.partialorder %v4322_v30, inf }
 0x5b0   :  { %6584 = vmatpush3.msra.mxu1 %v7951_v6  ;;  %v4335_v6 = vmul.f32 %v6652_v14, %v4333_v62  ;;  %v4326_v57 = vsel %vm4325_vm1, %v4322_v30, %v4324_v16 }
 0x5b1   :  { %6585 = vmatprep.subr.mxu1 %v8105_v4  ;;  %v4329_v23 = vsel %vm4327_vm9, %v4328_v12, %v4326_v57 }
 0x5b2   :  { %6586 = vmatpush3.msra.mxu1 %v5161_v46  ;;  %v4337_v8 = vsel %vm4336_vm8, %v4333_v62, %v4335_v6 }
 0x5b3   :  { %6587 = vmatprep.subr.mxu1 %v8105_v4  ;;  %v4340_v11 = vsel %vm4338_vm10, %v4339_v45, %v4337_v8 }
 0x5b4   :  { %6588 = vmatpush3.msra.mxu1 %v5164_v9  ;;  %v4341_v49 = vmul.f32 %v4340_v11, %v4329_v23 }
 0x5b5   :  { %6590 = vmatmul.mubr.f32.vlgmr.msra.gmra.mxu1 %v7795_v26 }
 0x5b6   :  { %v4342_v51 = vmax.f32 %v4341_v49, 1e-08 }
 0x5b8   :  { %6653 = vrcp.f32 %v4342_v51 }
 0x5c5   :  { %v6654_v27 = vpop.eup %6653 }
 0x5c6   :  { %v4344_v33 = vmul.f32 %v6654_v27, %v4318_v41 }
 0x62e   :  { %v4716_v54 = vpop.f32.mrf.mxu0 }
 0x630   :  { %v6470_v53 = vpop.f32.mrf.mxu0 }
 0x637   :  { %v4807_v38 = vpop.f32.mrf.mxu1  ;;  %v4887_v34 = vpop.f32.mrf.mxu0 }
 0x638   :  { %v4808_v37 = vadd.f32 %v4807_v38, %v4716_v54 }
 0x639   :  { %v6481_v43 = vpop.f32.mrf.mxu1  ;;  %v6492_v35 = vpop.f32.mrf.mxu0 }
 0x63a   :  { %v4888_v58 = vadd.f32 %v4887_v34, %v4808_v37 }
 0x641   :  { %v4964_v5 = vpop.f32.mrf.mxu1  ;;  %v5047_v63 = vpop.f32.mrf.mxu0 }
 0x642   :  { %v4965_v1 = vadd.f32 %v4964_v5, %v4888_v58 }
 0x643   :  { %v6503_v19 = vpop.f32.mrf.mxu1  ;;  %v6514_v28 = vpop.f32.mrf.mxu0 }
 0x644   :  { %v5048_v59 = vadd.f32 %v5047_v63, %v4965_v1 }
 0x649   :  { %v5122_v60 = vpop.f32.mrf.mxu1 }
 0x64a   :  { %v5123_v2 = vadd.f32 %v5122_v60, %v5048_v59 }
 0x64b   :  { %v6525_v4 = vpop.f32.mrf.mxu1 }
 0x64c   :  { %5616 = vrot.lane.b32.xlu0 %v5123_v2, %s6692_s6 }
 0x65b   :  { %v5205_v26 = vpop.f32.mrf.mxu0 }
 0x65d   :  { %v6536_v56 = vpop.f32.mrf.mxu0 }
 0x664   :  { %v5296_v32 = vpop.f32.mrf.mxu1  ;;  %v5376_v22 = vpop.f32.mrf.mxu0 }
 0x665   :  { %v5297_v25 = vadd.f32 %v5296_v32, %v5205_v26 }
 0x666   :  { %v6547_v15 = vpop.f32.mrf.mxu1  ;;  %v6558_v36 = vpop.f32.mrf.mxu0 }
 0x667   :  { %v5377_v13 = vadd.f32 %v5376_v22, %v5297_v25 }
 0x66d   :  { %v5453_v39 = vpop.f32.mrf.mxu1 }
 0x66e   :  { %v5536_v48 = vpop.f32.mrf.mxu0  ;;  %v5454_v20 = vadd.f32 %v5453_v39, %v5377_v13 }
 0x66f   :  { %v6569_v7 = vpop.f32.mrf.mxu1 }
 0x670   :  { %v6580_v47 = vpop.f32.mrf.mxu0  ;;  %v5537_v0 = vadd.f32 %v5536_v48, %v5454_v20 }
 0x675   :  { %v5611_v31 = vpop.f32.mrf.mxu1 }
 0x676   :  { %v5612_v21 = vadd.f32 %v5611_v31, %v5537_v0 }
 0x677   :  { %v6591_v29 = vpop.f32.mrf.mxu1 }
 0x678   :  { %5620 = vrot.lane.b32.xlu1 %v5612_v21, %s6693_s8 }
 0x6be   :  { %v5617_v46 = vpop.permute.xlu0 %5616 }
 0x6bf   :  { %v5624_v52 = vsel %vm5623_vm11, %v4344_v33, %v5617_v46 }
 0x6ea   :  { %v5621_v50 = vpop.permute.xlu1 %5620 }
 0x6eb   :  { %v5626_v24 = vsel %vm5625_vm12, %v5624_v52, %v5621_v50 }
 0x6ec   :  { %v5627_v42 = vmul.f32 10.0, %v5626_v24 }
 0x6ee   :  { %v5628_v44 = vmul.f32 1.442695, %v5627_v42 }
 0x6f0   :  { %6655 = vpow2.f32 %v5628_v44 }
 0x6fd   :  { %v6656_v10 = vpop.eup %6655 }
 0x6fe   :  { %v5631_v17 = vsel %vm5630_vm13, %v6656_v10, -inf }
 0x6ff   :  { %5632 = vmax.xlane.f32.xlu1 %v5631_v17 }
 0x788   :  { %v5633_v9 = vpop.xlane.xlu1 %5632 }
 0x789   :  { %v5634_v61 = vsub.f32 %v6656_v10, %v5633_v9 }
 0x78b   :  { %v5635_v55 = vmul.f32 1.442695, %v5634_v61 }
 0x78d   :  { %6657 = vpow2.f32 %v5635_v55 }
 0x79a   :  { %v6658_v18 = vpop.eup %6657 }
 0x79b   :  { %v5637_v3 = vsel %vm5630_vm13, %v6658_v18, 0.0 }
 0x79c   :  { %5638 = vadd.xlane.f32.xlu0 %v5637_v3 }
 0x825   :  { %v5639_v54 = vpop.xlane.xlu0 %5638 }
 0x826   :  { %6659 = vrcp.f32 %v5639_v54 }
 0x833   :  { %v6660_v53 = vpop.eup %6659 }
 0x834   :  { %v5641_v38 = vmul.f32 %v6660_v53, %v6658_v18 }
 0x836   :  { %v5642_v34 = vsel %vm5630_vm13, %v5641_v38, -inf }
 0x837   :  { %5643 = vmax.xlane.f32.xlu0 %v5642_v34 }
 0x8c0   :  { %v5644_v43 = vpop.xlane.xlu0 %5643 }
 0x8c1   :  { %v5645_v35 = vsub.f32 %v5641_v38, %v5644_v43 }
 0x8c3   :  { %v5646_v37 = vmul.f32 1.442695, %v5645_v35 }
 0x8c5   :  { %6661 = vpow2.f32 %v5646_v37 }
 0x8d2   :  { %v6662_v58 = vpop.eup %6661 }
 0x8d3   :  { %v5648_v5 = vsel %vm5630_vm13, %v6662_v58, 0.0 }
 0x8d4   :  { %5649 = vadd.xlane.f32.xlu1 %v5648_v5 }
 0x95d   :  { %v5650_v63 = vpop.xlane.xlu1 %5649 }
 0x95e   :  { %6663 = vlog2.f32 %v5650_v63 }
 0x96b   :  { %v6664_v1 = vpop.eup %6663 }
 0x96c   :  { %v5652_v19 = vmul.f32 0.6931472, %v6664_v1 }
 0x96e   :  { %v5653_v28 = vadd.f32 %v5652_v19, %v5644_v43 }
 0x970   :  { %v5654_v59 = vsub.f32 %v5653_v28, %v5641_v38 }
 0x972   :  { %v5655_v60 = vsel %vm5623_vm11, %v5654_v59, 0.0 }
 0x973   :  { %v5656_v2 = vrot.slane %v5655_v60, 4 }
 0x975   :  { %v5657_v4 = vadd.f32 %v5656_v2, %v5655_v60 }
 0x977   :  { %v5658_v26 = vrot.slane %v5657_v4, 2 }
 0x979   :  { %v5659_v56 = vadd.f32 %v5658_v26, %v5657_v4 }
 0x97b   :  { %v5660_v32 = vrot.slane %v5659_v56, 1 }
 0x97d   :  { %v5661_v22 = vadd.f32 %v5660_v32, %v5659_v56 }
 0x97f   :  { %v5662_v15 = vmul.f32 0.125, %v5661_v22 }
 0x981   :  { %5664 = vst.msk [vmem:[#allocation2] sm:$0x1] %vm5663_vm14, %v5662_v15 }
 0x982   :  { %6676 = shalt.err (!%p6673_p4)
}
 0x983   :  { %5674 = dma.vmem_to_hbm [thread:$0]  %s5672_s1, 16, %s8044_s13, [#allocation3]  }
 0x984   :  { %6685 = dma.done.wait [#allocation3], 16  }
 0x985   :  { %6686 = vsyncadd [#allocation3], 4294967280 }
 0x986   :  { %5678 = vsyncpa [#allocation3], 1 }

</bundles_post_ra>
